<compile_context>
chip_gen: v6e
topology: v6e:2x2x1
jax: 0.10.0
libtpu: 0.0.40
codegen_flags: <defaults>
</compile_context>

<pallas_src>
import jax
import jax.numpy as jnp
from jax.experimental import pallas as pl
from jax.experimental.pallas import tpu as pltpu

LANE = 128          # lane width; all feature dims are padded to multiples of this
TILE_M_BIG = 256    # row tile of A_in / output rows for large graphs
TILE_K_BIG = 512    # reduction tile over columns of A_in for large graphs


def _round_up(x, m):
    return ((x + m - 1) // m) * m


def _pad2d(x, rows, cols):
    r, c = x.shape
    return jnp.pad(x, ((0, rows - r), (0, cols - c)))


def _choose_tiles(n):
    """Pick (n_pad, tile_m, tile_k) for the aggregator grid.

    Small graphs: single tile (no padding waste, no grid overhead).
    Large graphs: (256, 512) tiles; n padded to a multiple of 512 so both
    tiles divide n_pad evenly.
    """
    n128 = _round_up(n, LANE)
    if n128 <= 512:
        return n128, n128, n128
    n_pad = _round_up(n, TILE_K_BIG)   # 512 is a multiple of 256 as well
    return n_pad, TILE_M_BIG, TILE_K_BIG


# ---------------------------------------------------------------------------
# Kernel 1: one bi-interaction Aggregator layer.
#   side = A_in @ ego                      (tiled K-reduction into acc scratch)
#   sum  = LeakyReLU((ego + side) @ W1 + b1)
#   bi   = LeakyReLU((ego * side) @ W2 + b2)
#   out  = sum + bi                        (message_dropout = identity at eval)
#   norm = L2-normalize(out, dim=1)        (F.normalize, eps=1e-12)
# W1 / W2 are pre-transposed to (d_in, d_out) by the wrapper.
# ---------------------------------------------------------------------------
def aggregator_bi_kernel(a_ref, ego_k_ref, ego_row_ref,
                         w1_ref, b1_ref, w2_ref, b2_ref,
                         out_ref, norm_ref, acc_ref):
    k = pl.program_id(1)

    @pl.when(k == 0)
    def _():
        acc_ref[...] = jnp.zeros_like(acc_ref)

    # side accumulation: (TM, TK) @ (TK, D_in) -> (TM, D_in)
    acc_ref[...] += jnp.dot(a_ref[...], ego_k_ref[...],
                            preferred_element_type=jnp.float32)

    @pl.when(k == pl.num_programs(1) - 1)
    def _():
        ego = ego_row_ref[...]
        side = acc_ref[...]
        s = ego + side
        p = ego * side

        h1 = jnp.dot(s, w1_ref[...], preferred_element_type=jnp.float32) + b1_ref[...]
        h2 = jnp.dot(p, w2_ref[...], preferred_element_type=jnp.float32) + b2_ref[...]

        neg_slope = 0.01  # nn.LeakyReLU() default
        h1 = jnp.where(h1 >= 0, h1, neg_slope * h1)
        h2 = jnp.where(h2 >= 0, h2, neg_slope * h2)

        out = h1 + h2
        out_ref[...] = out

        # F.normalize(x, p=2, dim=1): x / max(||x||, 1e-12)
        ss = jnp.sum(out * out, axis=1, keepdims=True)
        inv = jax.lax.rsqrt(jnp.maximum(ss, 1e-24))
        norm_ref[...] = out * inv


def aggregator_layer(ego_pad, a_pad, w1t_pad, b1_pad, w2t_pad, b2_pad,
                     tile_m, tile_k):
    n_pad, d_in_pad = ego_pad.shape
    d_out_pad = w1t_pad.shape[1]
    grid = (n_pad // tile_m, n_pad // tile_k)

    out_shapes = (
        jax.ShapeDtypeStruct((n_pad, d_out_pad), jnp.float32),
        jax.ShapeDtypeStruct((n_pad, d_out_pad), jnp.float32),
    )
    return pl.pallas_call(
        aggregator_bi_kernel,
        out_shape=out_shapes,
        grid=grid,
        in_specs=[
            pl.BlockSpec((tile_m, tile_k), lambda i, k: (i, k)),        # A tile
            pl.BlockSpec((tile_k, d_in_pad), lambda i, k: (k, 0)),      # ego (K slice)
            pl.BlockSpec((tile_m, d_in_pad), lambda i, k: (i, 0)),      # ego (row slice)
            pl.BlockSpec((d_in_pad, d_out_pad), lambda i, k: (0, 0)),   # W1^T
            pl.BlockSpec((1, d_out_pad), lambda i, k: (0, 0)),          # b1
            pl.BlockSpec((d_in_pad, d_out_pad), lambda i, k: (0, 0)),   # W2^T
            pl.BlockSpec((1, d_out_pad), lambda i, k: (0, 0)),          # b2
        ],
        out_specs=(
            pl.BlockSpec((tile_m, d_out_pad), lambda i, k: (i, 0)),
            pl.BlockSpec((tile_m, d_out_pad), lambda i, k: (i, 0)),
        ),
        scratch_shapes=[pltpu.VMEM((tile_m, d_in_pad), jnp.float32)],
        compiler_params=pltpu.CompilerParams(
            dimension_semantics=("parallel", "arbitrary")),
    )(a_pad, ego_pad, ego_pad, w1t_pad, b1_pad, w2t_pad, b2_pad)


# ---------------------------------------------------------------------------
# Kernel 2: final CF score  cf_score = user_embed @ item_embed^T
# item_embed is pre-transposed to (D, n_items) by the wrapper (lane-dense out).
# ---------------------------------------------------------------------------
def score_kernel(u_ref, it_ref, o_ref):
    o_ref[...] = jnp.dot(u_ref[...], it_ref[...],
                         preferred_element_type=jnp.float32)


def cf_score(user_embed_pad, item_embed_t_pad, tile_u=128, tile_i=128):
    u_pad, k_pad = user_embed_pad.shape
    i_pad = item_embed_t_pad.shape[1]
    grid = (u_pad // tile_u, i_pad // tile_i)
    return pl.pallas_call(
        score_kernel,
        out_shape=jax.ShapeDtypeStruct((u_pad, i_pad), jnp.float32),
        grid=grid,
        in_specs=[
            pl.BlockSpec((tile_u, k_pad), lambda i, j: (i, 0)),
            pl.BlockSpec((k_pad, tile_i), lambda i, j: (0, j)),
        ],
        out_specs=pl.BlockSpec((tile_u, tile_i), lambda i, j: (i, j)),
        compiler_params=pltpu.CompilerParams(
            dimension_semantics=("parallel", "parallel")),
    )(user_embed_pad, item_embed_t_pad)


# ---------------------------------------------------------------------------
# Model glue (parameter setup, padding, layer stacking, id gather) in JAX.
# ---------------------------------------------------------------------------
def xavier_uniform(key, shape, fan_in, fan_out):
    limit = jnp.sqrt(6.0 / (fan_in + fan_out))
    return jax.random.uniform(key, shape, jnp.float32, -limit, limit)


def init_params(key, n_total, embed_dim, conv_dims):
    keys = jax.random.split(key, 2 + 4 * len(conv_dims))
    # entity_user_embed weight (xavier uniform, padding_idx=0 -> row 0 zero)
    ew = xavier_uniform(keys[0], (n_total, embed_dim), n_total, embed_dim)
    ew = ew.at[0].set(0.0)
    layers = []
    dims = [embed_dim] + list(conv_dims)
    ki = 1
    for k in range(len(conv_dims)):
        din, dout = dims[k], dims[k + 1]
        w1 = xavier_uniform(keys[ki], (dout, din), din, dout); ki += 1
        w2 = xavier_uniform(keys[ki], (dout, din), din, dout); ki += 1
        bound = 1.0 / jnp.sqrt(din)
        b1 = jax.random.uniform(keys[ki], (dout,), jnp.float32, -bound, bound); ki += 1
        b2 = jax.random.uniform(keys[ki], (dout,), jnp.float32, -bound, bound); ki += 1
        layers.append((w1, b1, w2, b2))
    return ew, layers


def calc_cf_embeddings(entity_user_embed, a_in, agg_layers):
    """Returns the padded concatenated all_embed.  Padded columns are zero for
    all real rows, so downstream dot products are unaffected."""
    n, d0 = entity_user_embed.shape
    n_pad, tile_m, tile_k = _choose_tiles(n)
    d0_pad = _round_up(d0, LANE)

    a_pad = _pad2d(a_in, n_pad, n_pad)
    ego_pad = _pad2d(entity_user_embed, n_pad, d0_pad)

    all_blocks = [ego_pad]
    for (w1, b1, w2, b2) in agg_layers:
        d_out = w1.shape[0]
        d_in_pad = ego_pad.shape[1]
        d_out_pad = _round_up(d_out, LANE)
        # pre-transpose weights to (d_in, d_out) and zero-pad to lane-dense dims
        w1t = _pad2d(w1.T, d_in_pad, d_out_pad)
        w2t = _pad2d(w2.T, d_in_pad, d_out_pad)
        b1p = _pad2d(b1.reshape(1, -1), 1, d_out_pad)
        b2p = _pad2d(b2.reshape(1, -1), 1, d_out_pad)

        out_pad, norm_pad = aggregator_layer(ego_pad, a_pad, w1t, b1p, w2t, b2p,
                                             tile_m, tile_k)
        ego_pad = out_pad                 # next layer consumes un-normalized out
        all_blocks.append(norm_pad)       # concat uses the normalized embeds
    # TODO(synk): write each norm block into a column slice of a pre-allocated
    #   all_embed buffer via input_output_aliases to drop this concatenate.
    return jnp.concatenate(all_blocks, axis=1)


def calc_score(entity_user_embed, a_in, agg_layers, user_ids, item_ids):
    all_embed_pad = calc_cf_embeddings(entity_user_embed, a_in, agg_layers)
    # calc_one_embeddings with check_train_dropoutnet_phase=False -> plain gather
    user_embed = jnp.take(all_embed_pad, user_ids, axis=0)
    item_embed = jnp.take(all_embed_pad, item_ids, axis=0)

    n_u, k_pad = user_embed.shape
    n_i = item_embed.shape[0]
    u_pad = _round_up(n_u, 128)
    i_pad = _round_up(n_i, 128)
    user_p = _pad2d(user_embed, u_pad, k_pad)
    item_t = _pad2d(item_embed, i_pad, k_pad).T   # (k_pad, i_pad)

    score_pad = cf_score(user_p, item_t)
    return score_pad[:n_u, :n_i]


# ---------------------------------------------------------------------------
# Pure-JAX reference for the same predict path (correctness check only).
# ---------------------------------------------------------------------------
def reference_score(entity_user_embed, a_in, agg_layers, user_ids, item_ids):
    hp = jax.lax.Precision.HIGHEST
    ego = entity_user_embed
    all_embed = [ego]
    for (w1, b1, w2, b2) in agg_layers:
        side = jnp.dot(a_in, ego, precision=hp)
        s = ego + side
        p = ego * side
        h1 = jnp.dot(s, w1.T, precision=hp) + b1
        h2 = jnp.dot(p, w2.T, precision=hp) + b2
        h1 = jnp.where(h1 >= 0, h1, 0.01 * h1)
        h2 = jnp.where(h2 >= 0, h2, 0.01 * h2)
        out = h1 + h2
        nrm = jnp.sqrt(jnp.sum(out * out, axis=1, keepdims=True))
        all_embed.append(out / jnp.maximum(nrm, 1e-12))
        ego = out
    all_embed = jnp.concatenate(all_embed, axis=1)
    ue = all_embed[user_ids]
    ie = all_embed[item_ids]
    return jnp.dot(ue, ie.T, precision=hp)


if __name__ == "__main__":
    key = jax.random.PRNGKey(0)
    k_param, k_a, k_uid, k_iid = jax.random.split(key, 4)

    # small shapes consistent with the module
    n_users, n_entities = 8, 24
    n_total = n_users + n_entities            # 32
    embed_dim = 32
    conv_dims = [16, 8]                       # args.conv_dim_list

    entity_user_embed, agg_layers = init_params(k_param, n_total, embed_dim, conv_dims)

    # dense attention matrix A_in (row-stochastic, like torch.sparse.softmax(dim=1))
    a_logits = jax.random.normal(k_a, (n_total, n_total), jnp.float32)
    a_in = jax.nn.softmax(a_logits, axis=1)

    # user ids live in [n_entities, n_entities + n_users), item ids in [0, n_entities)
    user_ids = jax.random.randint(k_uid, (4,), n_entities, n_total)
    item_ids = jax.random.randint(k_iid, (6,), 0, n_entities)

    score_fn = jax.jit(calc_score)
    score = score_fn(entity_user_embed, a_in, agg_layers, user_ids, item_ids)
    score = jax.block_until_ready(score)
    assert score.shape == (4, 6)

    ref = reference_score(entity_user_embed, a_in, agg_layers, user_ids, item_ids)
    ref = jax.block_until_ready(ref)
    assert bool(jnp.all(jnp.isfinite(score)))
    assert bool(jnp.allclose(score, ref, rtol=2e-2, atol=2e-2)), "mismatch vs reference"

    print("KERNEL_OK")
</pallas_src>

<mosaic_0001>
module attributes {stable_mosaic.version = 11 : i64} {
  func.func @aggregator_bi_kernel(%arg0: i32, %arg1: i32, %arg2: memref<128x128xf32, #tpu.memory_space<vmem>>, %arg3: memref<128x128xf32, #tpu.memory_space<vmem>>, %arg4: memref<128x128xf32, #tpu.memory_space<vmem>>, %arg5: memref<128x128xf32, #tpu.memory_space<vmem>>, %arg6: memref<1x128xf32, #tpu.memory_space<vmem>>, %arg7: memref<128x128xf32, #tpu.memory_space<vmem>>, %arg8: memref<1x128xf32, #tpu.memory_space<vmem>>, %arg9: memref<128x128xf32, #tpu.memory_space<vmem>>, %arg10: memref<128x128xf32, #tpu.memory_space<vmem>>, %arg11: memref<128x128xf32, #tpu.memory_space<vmem>>) attributes {dimension_semantics = [#tpu.dimension_semantics<parallel>, #tpu.dimension_semantics<arbitrary>], iteration_bounds = array<i64: 1, 1>, scalar_prefetch = 0 : i64, scratch_operands = 1 : i64, tpu.core_type = #tpu.core_type<tc>, window_params = [{transform_indices = @transform_0, window_bounds = array<i64: 128, 128>}, {transform_indices = @transform_1, window_bounds = array<i64: 128, 128>}, {transform_indices = @transform_2, window_bounds = array<i64: 128, 128>}, {pipeline_mode = #tpu.pipeline_mode<synchronous>, transform_indices = @transform_3, window_bounds = array<i64: 128, 128>}, {pipeline_mode = #tpu.pipeline_mode<synchronous>, transform_indices = @transform_4, window_bounds = array<i64: 1, 128>}, {pipeline_mode = #tpu.pipeline_mode<synchronous>, transform_indices = @transform_5, window_bounds = array<i64: 128, 128>}, {pipeline_mode = #tpu.pipeline_mode<synchronous>, transform_indices = @transform_6, window_bounds = array<i64: 1, 128>}, {transform_indices = @transform_7, window_bounds = array<i64: 128, 128>}, {transform_indices = @transform_8, window_bounds = array<i64: 128, 128>}]} {
    %c0_i32 = arith.constant 0 : i32
    %0 = arith.cmpi eq, %arg1, %c0_i32 : i32
    %1 = arith.extui %0 : i1 to i32
    %c0_i32_0 = arith.constant 0 : i32
    %2 = arith.cmpi ne, %1, %c0_i32_0 : i32
    scf.if %2 {
      %cst_10 = arith.constant 0.000000e+00 : f32
      %12 = vector.broadcast %cst_10 : f32 to vector<128x128xf32>
      %c0_11 = arith.constant 0 : index
      %c0_12 = arith.constant 0 : index
      %13 = vector.load %arg11[%c0_11, %c0_12] : memref<128x128xf32, #tpu.memory_space<vmem>>, vector<128x128xf32>
      tpu.vector_store %arg11[%c0_11, %c0_12], %12 {strides = array<i32>} : memref<128x128xf32, #tpu.memory_space<vmem>>, vector<128x128xf32>,
    } else {
    }
    %c0 = arith.constant 0 : index
    %c0_1 = arith.constant 0 : index
    %3 = vector.load %arg11[%c0, %c0_1] : memref<128x128xf32, #tpu.memory_space<vmem>>, vector<128x128xf32>
    %c0_2 = arith.constant 0 : index
    %c0_3 = arith.constant 0 : index
    %4 = vector.load %arg2[%c0_2, %c0_3] : memref<128x128xf32, #tpu.memory_space<vmem>>, vector<128x128xf32>
    %c0_4 = arith.constant 0 : index
    %c0_5 = arith.constant 0 : index
    %5 = vector.load %arg3[%c0_4, %c0_5] : memref<128x128xf32, #tpu.memory_space<vmem>>, vector<128x128xf32>
    %cst = arith.constant dense<0.000000e+00> : vector<128x128xf32>
    %6 = tpu.matmul %4, %5, %cst {dimension_numbers = #tpu.dot_dimension_numbers<[1], [0], [0], [1], [0, 0, 1, 1], [], []>} : vector<128x128xf32>, vector<128x128xf32>, vector<128x128xf32> -> vector<128x128xf32>
    %7 = arith.addf %3, %6 : vector<128x128xf32>
    %c0_6 = arith.constant 0 : index
    %c0_7 = arith.constant 0 : index
    %8 = vector.load %arg11[%c0_6, %c0_7] : memref<128x128xf32, #tpu.memory_space<vmem>>, vector<128x128xf32>
    tpu.vector_store %arg11[%c0_6, %c0_7], %7 {strides = array<i32>} : memref<128x128xf32, #tpu.memory_space<vmem>>, vector<128x128xf32>,
    %c0_i32_8 = arith.constant 0 : i32
    %9 = arith.cmpi eq, %arg1, %c0_i32_8 : i32
    %10 = arith.extui %9 : i1 to i32
    %c0_i32_9 = arith.constant 0 : i32
    %11 = arith.cmpi ne, %10, %c0_i32_9 : i32
    scf.if %11 {
      %c0_10 = arith.constant 0 : index
      %c0_11 = arith.constant 0 : index
      %12 = vector.load %arg4[%c0_10, %c0_11] : memref<128x128xf32, #tpu.memory_space<vmem>>, vector<128x128xf32>
      %c0_12 = arith.constant 0 : index
      %c0_13 = arith.constant 0 : index
      %13 = vector.load %arg11[%c0_12, %c0_13] : memref<128x128xf32, #tpu.memory_space<vmem>>, vector<128x128xf32>
      %14 = arith.addf %12, %13 : vector<128x128xf32>
      %15 = arith.mulf %12, %13 : vector<128x128xf32>
      %c0_14 = arith.constant 0 : index
      %c0_15 = arith.constant 0 : index
      %16 = vector.load %arg5[%c0_14, %c0_15] : memref<128x128xf32, #tpu.memory_space<vmem>>, vector<128x128xf32>
      %cst_16 = arith.constant dense<0.000000e+00> : vector<128x128xf32>
      %17 = tpu.matmul %14, %16, %cst_16 {dimension_numbers = #tpu.dot_dimension_numbers<[1], [0], [0], [1], [0, 0, 1, 1], [], []>} : vector<128x128xf32>, vector<128x128xf32>, vector<128x128xf32> -> vector<128x128xf32>
      %c0_17 = arith.constant 0 : index
      %c0_18 = arith.constant 0 : index
      %18 = vector.load %arg6[%c0_17, %c0_18] : memref<1x128xf32, #tpu.memory_space<vmem>>, vector<1x128xf32>
      %19 = vector.broadcast %18 : vector<1x128xf32> to vector<128x128xf32>
      %20 = arith.addf %17, %19 : vector<128x128xf32>
      %c0_19 = arith.constant 0 : index
      %c0_20 = arith.constant 0 : index
      %21 = vector.load %arg7[%c0_19, %c0_20] : memref<128x128xf32, #tpu.memory_space<vmem>>, vector<128x128xf32>
      %cst_21 = arith.constant dense<0.000000e+00> : vector<128x128xf32>
      %22 = tpu.matmul %15, %21, %cst_21 {dimension_numbers = #tpu.dot_dimension_numbers<[1], [0], [0], [1], [0, 0, 1, 1], [], []>} : vector<128x128xf32>, vector<128x128xf32>, vector<128x128xf32> -> vector<128x128xf32>
      %c0_22 = arith.constant 0 : index
      %c0_23 = arith.constant 0 : index
      %23 = vector.load %arg8[%c0_22, %c0_23] : memref<1x128xf32, #tpu.memory_space<vmem>>, vector<1x128xf32>
      %24 = vector.broadcast %23 : vector<1x128xf32> to vector<128x128xf32>
      %25 = arith.addf %22, %24 : vector<128x128xf32>
      %cst_24 = arith.constant 0.000000e+00 : f32
      %26 = vector.broadcast %cst_24 : f32 to vector<128x128xf32>
      %27 = arith.cmpf oge, %20, %26 : vector<128x128xf32>
      %cst_25 = arith.constant 0.00999999977 : f32
      %28 = vector.broadcast %cst_25 : f32 to vector<128x128xf32>
      %29 = arith.mulf %28, %20 : vector<128x128xf32>
      %30 = arith.select %27, %20, %29 : vector<128x128xi1>, vector<128x128xf32>
      %cst_26 = arith.constant 0.000000e+00 : f32
      %31 = vector.broadcast %cst_26 : f32 to vector<128x128xf32>
      %32 = arith.cmpf oge, %25, %31 : vector<128x128xf32>
      %cst_27 = arith.constant 0.00999999977 : f32
      %33 = vector.broadcast %cst_27 : f32 to vector<128x128xf32>
      %34 = arith.mulf %33, %25 : vector<128x128xf32>
      %35 = arith.select %32, %25, %34 : vector<128x128xi1>, vector<128x128xf32>
      %36 = arith.addf %30, %35 : vector<128x128xf32>
      %c0_28 = arith.constant 0 : index
      %c0_29 = arith.constant 0 : index
      %37 = vector.load %arg9[%c0_28, %c0_29] : memref<128x128xf32, #tpu.memory_space<vmem>>, vector<128x128xf32>
      tpu.vector_store %arg9[%c0_28, %c0_29], %36 {strides = array<i32>} : memref<128x128xf32, #tpu.memory_space<vmem>>, vector<128x128xf32>,
      %38 = arith.mulf %36, %36 : vector<128x128xf32>
      %cst_30 = arith.constant dense<0.000000e+00> : vector<128xf32>
      %39 = vector.multi_reduction <add>, %38, %cst_30 [1] : vector<128x128xf32> to vector<128xf32>
      %40 = vector.shape_cast %39 : vector<128xf32> to vector<128x1xf32>
      %cst_31 = arith.constant 1.000000e-24 : f32
      %41 = vector.broadcast %cst_31 : f32 to vector<128x1xf32>
      %42 = arith.maximumf %40, %41 : vector<128x1xf32>
      %43 = math.rsqrt %42 : vector<128x1xf32>
      %44 = vector.broadcast %43 : vector<128x1xf32> to vector<128x128xf32>
      %45 = arith.mulf %36, %44 : vector<128x128xf32>
      %c0_32 = arith.constant 0 : index
      %c0_33 = arith.constant 0 : index
      %46 = vector.load %arg10[%c0_32, %c0_33] : memref<128x128xf32, #tpu.memory_space<vmem>>, vector<128x128xf32>
      tpu.vector_store %arg10[%c0_32, %c0_33], %45 {strides = array<i32>} : memref<128x128xf32, #tpu.memory_space<vmem>>, vector<128x128xf32>,
    } else {
    }
    return
  }
  func.func @transform_0(%arg0: i32, %arg1: i32) -> (i32, i32) {
    %c0_i32 = arith.constant 0 : i32
    return %arg0, %arg1 : i32, i32
  }
  func.func @transform_1(%arg0: i32, %arg1: i32) -> (i32, i32) {
    %c0_i32 = arith.constant 0 : i32
    %c0_i32_0 = arith.constant 0 : i32
    return %arg1, %c0_i32 : i32, i32
  }
  func.func @transform_2(%arg0: i32, %arg1: i32) -> (i32, i32) {
    %c0_i32 = arith.constant 0 : i32
    %c0_i32_0 = arith.constant 0 : i32
    return %arg0, %c0_i32 : i32, i32
  }
  func.func @transform_3(%arg0: i32, %arg1: i32) -> (i32, i32) {
    %c0_i32 = arith.constant 0 : i32
    %c0_i32_0 = arith.constant 0 : i32
    %c0_i32_1 = arith.constant 0 : i32
    return %c0_i32, %c0_i32_0 : i32, i32
  }
  func.func @transform_4(%arg0: i32, %arg1: i32) -> (i32, i32) {
    %c0_i32 = arith.constant 0 : i32
    %c0_i32_0 = arith.constant 0 : i32
    %c0_i32_1 = arith.constant 0 : i32
    return %c0_i32, %c0_i32_0 : i32, i32
  }
  func.func @transform_5(%arg0: i32, %arg1: i32) -> (i32, i32) {
    %c0_i32 = arith.constant 0 : i32
    %c0_i32_0 = arith.constant 0 : i32
    %c0_i32_1 = arith.constant 0 : i32
    return %c0_i32, %c0_i32_0 : i32, i32
  }
  func.func @transform_6(%arg0: i32, %arg1: i32) -> (i32, i32) {
    %c0_i32 = arith.constant 0 : i32
    %c0_i32_0 = arith.constant 0 : i32
    %c0_i32_1 = arith.constant 0 : i32
    return %c0_i32, %c0_i32_0 : i32, i32
  }
  func.func @transform_7(%arg0: i32, %arg1: i32) -> (i32, i32) {
    %c0_i32 = arith.constant 0 : i32
    %c0_i32_0 = arith.constant 0 : i32
    return %arg0, %c0_i32 : i32, i32
  }
  func.func @transform_8(%arg0: i32, %arg1: i32) -> (i32, i32) {
    %c0_i32 = arith.constant 0 : i32
    %c0_i32_0 = arith.constant 0 : i32
    return %arg0, %c0_i32 : i32, i32
  }
}

module attributes {stable_mosaic.version = 11 : i64} {
  func.func @aggregator_bi_kernel(%arg0: i32, %arg1: i32, %arg2: memref<128x128xf32, #tpu.memory_space<vmem>>, %arg3: memref<128x128xf32, #tpu.memory_space<vmem>>, %arg4: memref<128x128xf32, #tpu.memory_space<vmem>>, %arg5: memref<128x128xf32, #tpu.memory_space<vmem>>, %arg6: memref<1x128xf32, #tpu.memory_space<vmem>>, %arg7: memref<128x128xf32, #tpu.memory_space<vmem>>, %arg8: memref<1x128xf32, #tpu.memory_space<vmem>>, %arg9: memref<128x128xf32, #tpu.memory_space<vmem>>, %arg10: memref<128x128xf32, #tpu.memory_space<vmem>>, %arg11: memref<128x128xf32, #tpu.memory_space<vmem>>) attributes {dimension_semantics = [#tpu.dimension_semantics<parallel>, #tpu.dimension_semantics<arbitrary>], iteration_bounds = array<i64: 1, 1>, scalar_prefetch = 0 : i64, scratch_operands = 1 : i64, tpu.core_type = #tpu.core_type<tc>, window_params = [{transform_indices = @transform_0, window_bounds = array<i64: 128, 128>}, {transform_indices = @transform_1, window_bounds = array<i64: 128, 128>}, {transform_indices = @transform_2, window_bounds = array<i64: 128, 128>}, {pipeline_mode = #tpu.pipeline_mode<synchronous>, transform_indices = @transform_3, window_bounds = array<i64: 128, 128>}, {pipeline_mode = #tpu.pipeline_mode<synchronous>, transform_indices = @transform_4, window_bounds = array<i64: 1, 128>}, {pipeline_mode = #tpu.pipeline_mode<synchronous>, transform_indices = @transform_5, window_bounds = array<i64: 128, 128>}, {pipeline_mode = #tpu.pipeline_mode<synchronous>, transform_indices = @transform_6, window_bounds = array<i64: 1, 128>}, {transform_indices = @transform_7, window_bounds = array<i64: 128, 128>}, {transform_indices = @transform_8, window_bounds = array<i64: 128, 128>}]} {
    %c0_i32 = arith.constant 0 : i32
    %0 = arith.cmpi eq, %arg1, %c0_i32 : i32
    %1 = arith.extui %0 : i1 to i32
    %c0_i32_0 = arith.constant 0 : i32
    %2 = arith.cmpi ne, %1, %c0_i32_0 : i32
    scf.if %2 {
      %cst_10 = arith.constant 0.000000e+00 : f32
      %12 = vector.broadcast %cst_10 : f32 to vector<128x128xf32>
      %c0_11 = arith.constant 0 : index
      %c0_12 = arith.constant 0 : index
      %13 = vector.load %arg11[%c0_11, %c0_12] : memref<128x128xf32, #tpu.memory_space<vmem>>, vector<128x128xf32>
      tpu.vector_store %arg11[%c0_11, %c0_12], %12 {strides = array<i32>} : memref<128x128xf32, #tpu.memory_space<vmem>>, vector<128x128xf32>,
    } else {
    }
    %c0 = arith.constant 0 : index
    %c0_1 = arith.constant 0 : index
    %3 = vector.load %arg11[%c0, %c0_1] : memref<128x128xf32, #tpu.memory_space<vmem>>, vector<128x128xf32>
    %c0_2 = arith.constant 0 : index
    %c0_3 = arith.constant 0 : index
    %4 = vector.load %arg2[%c0_2, %c0_3] : memref<128x128xf32, #tpu.memory_space<vmem>>, vector<128x128xf32>
    %c0_4 = arith.constant 0 : index
    %c0_5 = arith.constant 0 : index
    %5 = vector.load %arg3[%c0_4, %c0_5] : memref<128x128xf32, #tpu.memory_space<vmem>>, vector<128x128xf32>
    %cst = arith.constant dense<0.000000e+00> : vector<128x128xf32>
    %6 = tpu.matmul %4, %5, %cst {dimension_numbers = #tpu.dot_dimension_numbers<[1], [0], [0], [1], [0, 0, 1, 1], [], []>} : vector<128x128xf32>, vector<128x128xf32>, vector<128x128xf32> -> vector<128x128xf32>
    %7 = arith.addf %3, %6 : vector<128x128xf32>
    %c0_6 = arith.constant 0 : index
    %c0_7 = arith.constant 0 : index
    %8 = vector.load %arg11[%c0_6, %c0_7] : memref<128x128xf32, #tpu.memory_space<vmem>>, vector<128x128xf32>
    tpu.vector_store %arg11[%c0_6, %c0_7], %7 {strides = array<i32>} : memref<128x128xf32, #tpu.memory_space<vmem>>, vector<128x128xf32>,
    %c0_i32_8 = arith.constant 0 : i32
    %9 = arith.cmpi eq, %arg1, %c0_i32_8 : i32
    %10 = arith.extui %9 : i1 to i32
    %c0_i32_9 = arith.constant 0 : i32
    %11 = arith.cmpi ne, %10, %c0_i32_9 : i32
    scf.if %11 {
      %c0_10 = arith.constant 0 : index
      %c0_11 = arith.constant 0 : index
      %12 = vector.load %arg4[%c0_10, %c0_11] : memref<128x128xf32, #tpu.memory_space<vmem>>, vector<128x128xf32>
      %c0_12 = arith.constant 0 : index
      %c0_13 = arith.constant 0 : index
      %13 = vector.load %arg11[%c0_12, %c0_13] : memref<128x128xf32, #tpu.memory_space<vmem>>, vector<128x128xf32>
      %14 = arith.addf %12, %13 : vector<128x128xf32>
      %15 = arith.mulf %12, %13 : vector<128x128xf32>
      %c0_14 = arith.constant 0 : index
      %c0_15 = arith.constant 0 : index
      %16 = vector.load %arg5[%c0_14, %c0_15] : memref<128x128xf32, #tpu.memory_space<vmem>>, vector<128x128xf32>
      %cst_16 = arith.constant dense<0.000000e+00> : vector<128x128xf32>
      %17 = tpu.matmul %14, %16, %cst_16 {dimension_numbers = #tpu.dot_dimension_numbers<[1], [0], [0], [1], [0, 0, 1, 1], [], []>} : vector<128x128xf32>, vector<128x128xf32>, vector<128x128xf32> -> vector<128x128xf32>
      %c0_17 = arith.constant 0 : index
      %c0_18 = arith.constant 0 : index
      %18 = vector.load %arg6[%c0_17, %c0_18] : memref<1x128xf32, #tpu.memory_space<vmem>>, vector<1x128xf32>
      %19 = vector.broadcast %18 : vector<1x128xf32> to vector<128x128xf32>
      %20 = arith.addf %17, %19 : vector<128x128xf32>
      %c0_19 = arith.constant 0 : index
      %c0_20 = arith.constant 0 : index
      %21 = vector.load %arg7[%c0_19, %c0_20] : memref<128x128xf32, #tpu.memory_space<vmem>>, vector<128x128xf32>
      %cst_21 = arith.constant dense<0.000000e+00> : vector<128x128xf32>
      %22 = tpu.matmul %15, %21, %cst_21 {dimension_numbers = #tpu.dot_dimension_numbers<[1], [0], [0], [1], [0, 0, 1, 1], [], []>} : vector<128x128xf32>, vector<128x128xf32>, vector<128x128xf32> -> vector<128x128xf32>
      %c0_22 = arith.constant 0 : index
      %c0_23 = arith.constant 0 : index
      %23 = vector.load %arg8[%c0_22, %c0_23] : memref<1x128xf32, #tpu.memory_space<vmem>>, vector<1x128xf32>
      %24 = vector.broadcast %23 : vector<1x128xf32> to vector<128x128xf32>
      %25 = arith.addf %22, %24 : vector<128x128xf32>
      %cst_24 = arith.constant 0.000000e+00 : f32
      %26 = vector.broadcast %cst_24 : f32 to vector<128x128xf32>
      %27 = arith.cmpf oge, %20, %26 : vector<128x128xf32>
      %cst_25 = arith.constant 0.00999999977 : f32
      %28 = vector.broadcast %cst_25 : f32 to vector<128x128xf32>
      %29 = arith.mulf %28, %20 : vector<128x128xf32>
      %30 = arith.select %27, %20, %29 : vector<128x128xi1>, vector<128x128xf32>
      %cst_26 = arith.constant 0.000000e+00 : f32
      %31 = vector.broadcast %cst_26 : f32 to vector<128x128xf32>
      %32 = arith.cmpf oge, %25, %31 : vector<128x128xf32>
      %cst_27 = arith.constant 0.00999999977 : f32
      %33 = vector.broadcast %cst_27 : f32 to vector<128x128xf32>
      %34 = arith.mulf %33, %25 : vector<128x128xf32>
      %35 = arith.select %32, %25, %34 : vector<128x128xi1>, vector<128x128xf32>
      %36 = arith.addf %30, %35 : vector<128x128xf32>
      %c0_28 = arith.constant 0 : index
      %c0_29 = arith.constant 0 : index
      %37 = vector.load %arg9[%c0_28, %c0_29] : memref<128x128xf32, #tpu.memory_space<vmem>>, vector<128x128xf32>
      tpu.vector_store %arg9[%c0_28, %c0_29], %36 {strides = array<i32>} : memref<128x128xf32, #tpu.memory_space<vmem>>, vector<128x128xf32>,
      %38 = arith.mulf %36, %36 : vector<128x128xf32>
      %cst_30 = arith.constant dense<0.000000e+00> : vector<128xf32>
      %39 = vector.multi_reduction <add>, %38, %cst_30 [1] : vector<128x128xf32> to vector<128xf32>
      %40 = vector.shape_cast %39 : vector<128xf32> to vector<128x1xf32>
      %cst_31 = arith.constant 1.000000e-24 : f32
      %41 = vector.broadcast %cst_31 : f32 to vector<128x1xf32>
      %42 = arith.maximumf %40, %41 : vector<128x1xf32>
      %43 = math.rsqrt %42 : vector<128x1xf32>
      %44 = vector.broadcast %43 : vector<128x1xf32> to vector<128x128xf32>
      %45 = arith.mulf %36, %44 : vector<128x128xf32>
      %c0_32 = arith.constant 0 : index
      %c0_33 = arith.constant 0 : index
      %46 = vector.load %arg10[%c0_32, %c0_33] : memref<128x128xf32, #tpu.memory_space<vmem>>, vector<128x128xf32>
      tpu.vector_store %arg10[%c0_32, %c0_33], %45 {strides = array<i32>} : memref<128x128xf32, #tpu.memory_space<vmem>>, vector<128x128xf32>,
    } else {
    }
    return
  }
  func.func @transform_0(%arg0: i32, %arg1: i32) -> (i32, i32) {
    %c0_i32 = arith.constant 0 : i32
    return %arg0, %arg1 : i32, i32
  }
  func.func @transform_1(%arg0: i32, %arg1: i32) -> (i32, i32) {
    %c0_i32 = arith.constant 0 : i32
    %c0_i32_0 = arith.constant 0 : i32
    return %arg1, %c0_i32 : i32, i32
  }
  func.func @transform_2(%arg0: i32, %arg1: i32) -> (i32, i32) {
    %c0_i32 = arith.constant 0 : i32
    %c0_i32_0 = arith.constant 0 : i32
    return %arg0, %c0_i32 : i32, i32
  }
  func.func @transform_3(%arg0: i32, %arg1: i32) -> (i32, i32) {
    %c0_i32 = arith.constant 0 : i32
    %c0_i32_0 = arith.constant 0 : i32
    %c0_i32_1 = arith.constant 0 : i32
    return %c0_i32, %c0_i32_0 : i32, i32
  }
  func.func @transform_4(%arg0: i32, %arg1: i32) -> (i32, i32) {
    %c0_i32 = arith.constant 0 : i32
    %c0_i32_0 = arith.constant 0 : i32
    %c0_i32_1 = arith.constant 0 : i32
    return %c0_i32, %c0_i32_0 : i32, i32
  }
  func.func @transform_5(%arg0: i32, %arg1: i32) -> (i32, i32) {
    %c0_i32 = arith.constant 0 : i32
    %c0_i32_0 = arith.constant 0 : i32
    %c0_i32_1 = arith.constant 0 : i32
    return %c0_i32, %c0_i32_0 : i32, i32
  }
  func.func @transform_6(%arg0: i32, %arg1: i32) -> (i32, i32) {
    %c0_i32 = arith.constant 0 : i32
    %c0_i32_0 = arith.constant 0 : i32
    %c0_i32_1 = arith.constant 0 : i32
    return %c0_i32, %c0_i32_0 : i32, i32
  }
  func.func @transform_7(%arg0: i32, %arg1: i32) -> (i32, i32) {
    %c0_i32 = arith.constant 0 : i32
    %c0_i32_0 = arith.constant 0 : i32
    return %arg0, %c0_i32 : i32, i32
  }
  func.func @transform_8(%arg0: i32, %arg1: i32) -> (i32, i32) {
    %c0_i32 = arith.constant 0 : i32
    %c0_i32_0 = arith.constant 0 : i32
    return %arg0, %c0_i32 : i32, i32
  }
}

module attributes {stable_mosaic.version = 11 : i64} {
  func.func @score_kernel(%arg0: i32, %arg1: i32, %arg2: memref<128x384xf32, #tpu.memory_space<vmem>>, %arg3: memref<384x128xf32, #tpu.memory_space<vmem>>, %arg4: memref<128x128xf32, #tpu.memory_space<vmem>>) attributes {dimension_semantics = [#tpu.dimension_semantics<parallel>, #tpu.dimension_semantics<parallel>], iteration_bounds = array<i64: 1, 1>, scalar_prefetch = 0 : i64, scratch_operands = 0 : i64, tpu.core_type = #tpu.core_type<tc>, window_params = [{transform_indices = @transform_0, window_bounds = array<i64: 128, 384>}, {transform_indices = @transform_1, window_bounds = array<i64: 384, 128>}, {transform_indices = @transform_2, window_bounds = array<i64: 128, 128>}]} {
    %c0 = arith.constant 0 : index
    %c0_0 = arith.constant 0 : index
    %0 = vector.load %arg2[%c0, %c0_0] : memref<128x384xf32, #tpu.memory_space<vmem>>, vector<128x384xf32>
    %c0_1 = arith.constant 0 : index
    %c0_2 = arith.constant 0 : index
    %1 = vector.load %arg3[%c0_1, %c0_2] : memref<384x128xf32, #tpu.memory_space<vmem>>, vector<384x128xf32>
    %cst = arith.constant dense<0.000000e+00> : vector<128x128xf32>
    %2 = tpu.matmul %0, %1, %cst {dimension_numbers = #tpu.dot_dimension_numbers<[1], [0], [0], [1], [0, 0, 1, 1], [], []>} : vector<128x384xf32>, vector<384x128xf32>, vector<128x128xf32> -> vector<128x128xf32>
    %c0_3 = arith.constant 0 : index
    %c0_4 = arith.constant 0 : index
    %3 = vector.load %arg4[%c0_3, %c0_4] : memref<128x128xf32, #tpu.memory_space<vmem>>, vector<128x128xf32>
    tpu.vector_store %arg4[%c0_3, %c0_4], %2 {strides = array<i32>} : memref<128x128xf32, #tpu.memory_space<vmem>>, vector<128x128xf32>,
    return
  }
  func.func @transform_0(%arg0: i32, %arg1: i32) -> (i32, i32) {
    %c0_i32 = arith.constant 0 : i32
    %c0_i32_0 = arith.constant 0 : i32
    return %arg0, %c0_i32 : i32, i32
  }
  func.func @transform_1(%arg0: i32, %arg1: i32) -> (i32, i32) {
    %c0_i32 = arith.constant 0 : i32
    %c0_i32_0 = arith.constant 0 : i32
    return %c0_i32, %arg1 : i32, i32
  }
  func.func @transform_2(%arg0: i32, %arg1: i32) -> (i32, i32) {
    %c0_i32 = arith.constant 0 : i32
    return %arg0, %arg1 : i32, i32
  }
}

</mosaic_0001>

<bundles_post_ra>
// kernel: calc_score.5
= control target key start
LH: loop header
LB: loop body
LE: loop exit
PB: predicated region body
PF: predicated region fallthrough
CT: control target
= control target key end

     0   :  { %s936_s1 = inlined_call_operand.vmem [shape: f32[384,128], index: 1, kind: input, shape index: {}]   ;;  %s937_s0 = inlined_call_operand.vmem [shape: f32[128,384], index: 0, kind: input, shape index: {}]   ;;  %s938_s2 = inlined_call_operand.vmem [shape: f32[128,128], index: 2, kind: output, shape index: {}]  }
   0x1   :  { %v90_v0 = vld [vmem:[%s936_s1 + $0xf8] sm:$0xff]  ;;  %v89_v2 = vld [vmem:[%s936_s1 + $0xf0] sm:$0xff]  ;;  %v88_v5 = vld [vmem:[%s936_s1 + $0xe8] sm:$0xff] }
   0x2   :  { %v74_v1 = vld [vmem:[%s936_s1 + $0x78] sm:$0xff]  ;;  %417 = vmatprep.subr.mxu0 %v90_v0  ;;  %v73_v4 = vld [vmem:[%s936_s1 + $0x70] sm:$0xff]  ;;  %v72_v7 = vld [vmem:[%s936_s1 + $0x68] sm:$0xff] }
   0x3   :  { %v106_v3 = vld [vmem:[%s936_s1 + $0x178] sm:$0xff]  ;;  %418 = vmatpush3.msra.mxu0 %v74_v1  ;;  %v105_v6 = vld [vmem:[%s936_s1 + $0x170] sm:$0xff]  ;;  %v104_v8 = vld [vmem:[%s936_s1 + $0x168] sm:$0xff] }
   0x4   :  { %529 = vmatprep.subr.mxu1 %v106_v3  ;;  %419 = vmatprep.subr.mxu0 %v89_v2  ;;  %v87_v9 = vld [vmem:[%s936_s1 + $0xe0] sm:$0xff]  ;;  %v86_v12 = vld [vmem:[%s936_s1 + $0xd8] sm:$0xff]  ;;  %v85_v15 = vld [vmem:[%s936_s1 + $0xd0] sm:$0xff] }
   0x5   :  { %530 = vmatpush3.msra.mxu1 %v106_v3  ;;  %420 = vmatpush3.msra.mxu0 %v73_v4  ;;  %v71_v10 = vld [vmem:[%s936_s1 + $0x60] sm:$0xff]  ;;  %v70_v13 = vld [vmem:[%s936_s1 + $0x58] sm:$0xff]  ;;  %v69_v16 = vld [vmem:[%s936_s1 + $0x50] sm:$0xff] }
   0x6   :  { %531 = vmatprep.subr.mxu1 %v105_v6  ;;  %421 = vmatprep.subr.mxu0 %v88_v5  ;;  %v103_v11 = vld [vmem:[%s936_s1 + $0x160] sm:$0xff]  ;;  %v102_v14 = vld [vmem:[%s936_s1 + $0x158] sm:$0xff]  ;;  %v101_v17 = vld [vmem:[%s936_s1 + $0x150] sm:$0xff] }
   0x7   :  { %532 = vmatpush3.msra.mxu1 %v105_v6  ;;  %422 = vmatpush3.msra.mxu0 %v72_v7  ;;  %v84_v18 = vld [vmem:[%s936_s1 + $0xc8] sm:$0xff]  ;;  %v83_v21 = vld [vmem:[%s936_s1 + $0xc0] sm:$0xff]  ;;  %v82_v24 = vld [vmem:[%s936_s1 + $0xb8] sm:$0xff] }
   0x8   :  { %533 = vmatprep.subr.mxu1 %v104_v8  ;;  %423 = vmatprep.subr.mxu0 %v87_v9  ;;  %v68_v19 = vld [vmem:[%s936_s1 + $0x48] sm:$0xff]  ;;  %v67_v22 = vld [vmem:[%s936_s1 + $0x40] sm:$0xff]  ;;  %v66_v25 = vld [vmem:[%s936_s1 + $0x38] sm:$0xff] }
   0x9   :  { %534 = vmatpush3.msra.mxu1 %v104_v8  ;;  %424 = vmatpush3.msra.mxu0 %v71_v10  ;;  %v100_v20 = vld [vmem:[%s936_s1 + $0x148] sm:$0xff]  ;;  %v99_v23 = vld [vmem:[%s936_s1 + $0x140] sm:$0xff]  ;;  %v98_v26 = vld [vmem:[%s936_s1 + $0x138] sm:$0xff] }
   0xa   :  { %535 = vmatprep.subr.mxu1 %v103_v11  ;;  %425 = vmatprep.subr.mxu0 %v86_v12  ;;  %v81_v27 = vld [vmem:[%s936_s1 + $0xb0] sm:$0xff]  ;;  %v80_v30 = vld [vmem:[%s936_s1 + $0xa8] sm:$0xff]  ;;  %v79_v33 = vld [vmem:[%s936_s1 + $0xa0] sm:$0xff] }
   0xb   :  { %536 = vmatpush3.msra.mxu1 %v103_v11  ;;  %426 = vmatpush3.msra.mxu0 %v70_v13  ;;  %v65_v28 = vld [vmem:[%s936_s1 + $0x30] sm:$0xff]  ;;  %v64_v31 = vld [vmem:[%s936_s1 + $0x28] sm:$0xff]  ;;  %v63_v34 = vld [vmem:[%s936_s1 + $0x20] sm:$0xff] }
   0xc   :  { %537 = vmatprep.subr.mxu1 %v102_v14  ;;  %427 = vmatprep.subr.mxu0 %v85_v15  ;;  %v97_v29 = vld [vmem:[%s936_s1 + $0x130] sm:$0xff]  ;;  %v96_v32 = vld [vmem:[%s936_s1 + $0x128] sm:$0xff]  ;;  %v95_v35 = vld [vmem:[%s936_s1 + $0x120] sm:$0xff] }
   0xd   :  { %538 = vmatpush3.msra.mxu1 %v102_v14  ;;  %428 = vmatpush3.msra.mxu0 %v69_v16  ;;  %v78_v36 = vld [vmem:[%s936_s1 + $0x98] sm:$0xff]  ;;  %v77_v39 = vld [vmem:[%s936_s1 + $0x90] sm:$0xff]  ;;  %v76_v42 = vld [vmem:[%s936_s1 + $0x88] sm:$0xff] }
   0xe   :  { %539 = vmatprep.subr.mxu1 %v101_v17  ;;  %429 = vmatprep.subr.mxu0 %v84_v18  ;;  %v62_v37 = vld [vmem:[%s936_s1 + $0x18] sm:$0xff]  ;;  %v61_v40 = vld [vmem:[%s936_s1 + $0x10] sm:$0xff]  ;;  %v60_v43 = vld [vmem:[%s936_s1 + $0x8] sm:$0xff] }
   0xf   :  { %540 = vmatpush3.msra.mxu1 %v101_v17  ;;  %430 = vmatpush3.msra.mxu0 %v68_v19  ;;  %v94_v38 = vld [vmem:[%s936_s1 + $0x118] sm:$0xff]  ;;  %v93_v41 = vld [vmem:[%s936_s1 + $0x110] sm:$0xff]  ;;  %v92_v44 = vld [vmem:[%s936_s1 + $0x108] sm:$0xff] }
  0x10   :  { %541 = vmatprep.subr.mxu1 %v100_v20  ;;  %431 = vmatprep.subr.mxu0 %v83_v21  ;;  %v75_v45 = vld [vmem:[%s936_s1 + $0x80] sm:$0xff]  ;;  %v12_v46 = vld [vmem:[%s937_s0 + $0x8] sm:$0xff]  ;;  %v13_v50 = vld [vmem:[%s937_s0 + $0x10] sm:$0xff] }
  0x11   :  { %542 = vmatpush3.msra.mxu1 %v100_v20  ;;  %432 = vmatpush3.msra.mxu0 %v67_v22  ;;  %v59_v47 = vld [vmem:[%s936_s1] sm:$0xff]  ;;  %v16_v51 = vld [vmem:[%s937_s0 + $0x28] sm:$0xff]  ;;  %v14_v54 = vld [vmem:[%s937_s0 + $0x18] sm:$0xff] }
  0x12   :  { %543 = vmatprep.subr.mxu1 %v99_v23  ;;  %433 = vmatprep.subr.mxu0 %v82_v24  ;;  %v11_v48 = vld [vmem:[%s937_s0] sm:$0xff]  ;;  %v18_v55 = vld [vmem:[%s937_s0 + $0x38] sm:$0xff]  ;;  %v25_v57 = vld [vmem:[%s937_s0 + $0x70] sm:$0xff] }
  0x13   :  { %544 = vmatpush3.msra.mxu1 %v99_v23  ;;  %434 = vmatpush3.msra.mxu0 %v66_v25  ;;  %v91_v49 = vld [vmem:[%s936_s1 + $0x100] sm:$0xff]  ;;  %v22_v56 = vld [vmem:[%s937_s0 + $0x58] sm:$0xff]  ;;  %v17_v58 = vld [vmem:[%s937_s0 + $0x30] sm:$0xff] }
  0x14   :  { %545 = vmatprep.subr.mxu1 %v98_v26  ;;  %435 = vmatprep.subr.mxu0 %v81_v27  ;;  %v15_v52 = vld [vmem:[%s937_s0 + $0x20] sm:$0xff]  ;;  %v21_v59 = vld [vmem:[%s937_s0 + $0x50] sm:$0xff]  ;;  %v28_v60 = vld [vmem:[%s937_s0 + $0x88] sm:$0xff] }
  0x15   :  { %546 = vmatpush3.msra.mxu1 %v98_v26  ;;  %436 = vmatpush3.msra.mxu0 %v65_v28  ;;  %v19_v53 = vld [vmem:[%s937_s0 + $0x40] sm:$0xff]  ;;  %v20_v62 = vld [vmem:[%s937_s0 + $0x48] sm:$0xff]  ;;  %v34_v0 = vld [vmem:[%s937_s0 + $0xb8] sm:$0xff] }
  0x16   :  { %547 = vmatprep.subr.mxu1 %v97_v29  ;;  %437 = vmatprep.subr.mxu0 %v80_v30  ;;  %v31_v61 = vld [vmem:[%s937_s0 + $0xa0] sm:$0xff]  ;;  %v24_v63 = vld [vmem:[%s937_s0 + $0x68] sm:$0xff]  ;;  %v37_v1 = vld [vmem:[%s937_s0 + $0xd0] sm:$0xff] }
  0x17   :  { %548 = vmatpush3.msra.mxu1 %v97_v29  ;;  %438 = vmatpush3.msra.mxu0 %v64_v31  ;;  %v23_v2 = vld [vmem:[%s937_s0 + $0x60] sm:$0xff]  ;;  %v40_v4 = vld [vmem:[%s937_s0 + $0xe8] sm:$0xff]  ;;  %v26_v6 = vld [vmem:[%s937_s0 + $0x78] sm:$0xff] }
  0x18   :  { %549 = vmatprep.subr.mxu1 %v96_v32  ;;  %439 = vmatprep.subr.mxu0 %v79_v33  ;;  %v27_v3 = vld [vmem:[%s937_s0 + $0x80] sm:$0xff]  ;;  %v30_v7 = vld [vmem:[%s937_s0 + $0x98] sm:$0xff]  ;;  %v49_v9 = vld [vmem:[%s937_s0 + $0x130] sm:$0xff] }
  0x19   :  { %550 = vmatpush3.msra.mxu1 %v96_v32  ;;  %440 = vmatpush3.msra.mxu0 %v63_v34  ;;  %v43_v5 = vld [vmem:[%s937_s0 + $0x100] sm:$0xff]  ;;  %v46_v8 = vld [vmem:[%s937_s0 + $0x118] sm:$0xff]  ;;  %v29_v10 = vld [vmem:[%s937_s0 + $0x90] sm:$0xff] }
  0x1a   :  { %551 = vmatprep.subr.mxu1 %v95_v35  ;;  %441 = vmatprep.subr.mxu0 %v78_v36  ;;  %v33_v11 = vld [vmem:[%s937_s0 + $0xb0] sm:$0xff]  ;;  %v52_v12 = vld [vmem:[%s937_s0 + $0x148] sm:$0xff]  ;;  %v55_v13 = vld [vmem:[%s937_s0 + $0x160] sm:$0xff] }
  0x1b   :  { %552 = vmatpush3.msra.mxu1 %v95_v35  ;;  %442 = vmatpush3.msra.mxu0 %v62_v37  ;;  %v32_v14 = vld [vmem:[%s937_s0 + $0xa8] sm:$0xff]  ;;  %v58_v16 = vld [vmem:[%s937_s0 + $0x178] sm:$0xff]  ;;  %v35_v17 = vld [vmem:[%s937_s0 + $0xc0] sm:$0xff] }
  0x1c   :  { %553 = vmatprep.subr.mxu1 %v94_v38  ;;  %443 = vmatprep.subr.mxu0 %v77_v39  ;;  %v36_v15 = vld [vmem:[%s937_s0 + $0xc8] sm:$0xff]  ;;  %v39_v18 = vld [vmem:[%s937_s0 + $0xe0] sm:$0xff]  ;;  %v38_v19 = vld [vmem:[%s937_s0 + $0xd8] sm:$0xff] }
  0x1d   :  { %554 = vmatpush3.msra.mxu1 %v94_v38  ;;  %444 = vmatpush3.msra.mxu0 %v61_v40  ;;  %v42_v20 = vld [vmem:[%s937_s0 + $0xf8] sm:$0xff]  ;;  %v41_v21 = vld [vmem:[%s937_s0 + $0xf0] sm:$0xff]  ;;  %v44_v23 = vld [vmem:[%s937_s0 + $0x108] sm:$0xff] }
  0x1e   :  { %555 = vmatprep.subr.mxu1 %v93_v41  ;;  %445 = vmatprep.subr.mxu0 %v76_v42  ;;  %v45_v22 = vld [vmem:[%s937_s0 + $0x110] sm:$0xff]  ;;  %v48_v24 = vld [vmem:[%s937_s0 + $0x128] sm:$0xff]  ;;  %v47_v25 = vld [vmem:[%s937_s0 + $0x120] sm:$0xff] }
  0x1f   :  { %556 = vmatpush3.msra.mxu1 %v93_v41  ;;  %446 = vmatpush3.msra.mxu0 %v60_v43  ;;  %v51_v26 = vld [vmem:[%s937_s0 + $0x140] sm:$0xff]  ;;  %v50_v27 = vld [vmem:[%s937_s0 + $0x138] sm:$0xff]  ;;  %v53_v29 = vld [vmem:[%s937_s0 + $0x150] sm:$0xff] }
  0x20   :  { %557 = vmatprep.subr.mxu1 %v92_v44  ;;  %447 = vmatprep.subr.mxu0 %v75_v45  ;;  %v54_v28 = vld [vmem:[%s937_s0 + $0x158] sm:$0xff]  ;;  %v57_v30 = vld [vmem:[%s937_s0 + $0x170] sm:$0xff]  ;;  %v56_v31 = vld [vmem:[%s937_s0 + $0x168] sm:$0xff] }
  0x21   :  { %171 = vmatprep.mubr.f32.mxu0 %v12_v46  ;;  %448 = vmatpush3.msra.mxu0 %v59_v47 }
  0x22   :  { %558 = vmatpush3.msra.mxu1 %v92_v44  ;;  %172 = vmatmul.mubr.f32.vlgmr.msra.gmra.mxu0 %v11_v48 }
  0x23   :  { %559 = vmatprep.subr.mxu1 %v91_v49  ;;  %561 = vmatprep.mubr.f32.mxu1 %v13_v50 }
  0x24   :  { %560 = vmatpush3.msra.mxu1 %v91_v49  ;;  %176 = vmatprep.mubr.f32.mxu0 %v15_v52 }
  0x25   :  { %562 = vmatmul.mubr.f32.vlgmr.msra.gmra.mxu1 %v16_v51 }
  0x26   :  { %564 = vmatprep.mubr.f32.mxu1 %v19_v53  ;;  %177 = vmatmul.mubr.f32.gmra.mxu0 %v14_v54 }
  0x27   :  { %181 = vmatprep.mubr.f32.mxu0 %v18_v55 }
  0x29   :  { %565 = vmatmul.mubr.f32.gmra.mxu1 %v22_v56 }
  0x2a   :  { %567 = vmatprep.mubr.f32.mxu1 %v25_v57  ;;  %182 = vmatmul.mubr.f32.gmra.mxu0 %v17_v58 }
  0x2b   :  { %186 = vmatprep.mubr.f32.mxu0 %v21_v59 }
  0x2d   :  { %568 = vmatmul.mubr.f32.gmra.mxu1 %v28_v60 }
  0x2e   :  { %570 = vmatprep.mubr.f32.mxu1 %v31_v61  ;;  %187 = vmatmul.mubr.f32.gmra.mxu0 %v20_v62 }
  0x2f   :  { %191 = vmatprep.mubr.f32.mxu0 %v24_v63 }
  0x31   :  { %571 = vmatmul.mubr.f32.gmra.mxu1 %v34_v0 }
  0x32   :  { %573 = vmatprep.mubr.f32.mxu1 %v37_v1  ;;  %192 = vmatmul.mubr.f32.gmra.mxu0 %v23_v2 }
  0x33   :  { %196 = vmatprep.mubr.f32.mxu0 %v27_v3 }
  0x35   :  { %574 = vmatmul.mubr.f32.gmra.mxu1 %v40_v4 }
  0x36   :  { %576 = vmatprep.mubr.f32.mxu1 %v43_v5  ;;  %197 = vmatmul.mubr.f32.gmra.mxu0 %v26_v6 }
  0x37   :  { %201 = vmatprep.mubr.f32.mxu0 %v30_v7 }
  0x39   :  { %577 = vmatmul.mubr.f32.gmra.mxu1 %v46_v8 }
  0x3a   :  { %579 = vmatprep.mubr.f32.mxu1 %v49_v9  ;;  %202 = vmatmul.mubr.f32.gmra.mxu0 %v29_v10 }
  0x3b   :  { %206 = vmatprep.mubr.f32.mxu0 %v33_v11 }
  0x3d   :  { %580 = vmatmul.mubr.f32.gmra.mxu1 %v52_v12 }
  0x3e   :  { %582 = vmatprep.mubr.f32.mxu1 %v55_v13  ;;  %207 = vmatmul.mubr.f32.gmra.mxu0 %v32_v14 }
  0x3f   :  { %211 = vmatprep.mubr.f32.mxu0 %v36_v15 }
  0x41   :  { %583 = vmatmul.mubr.f32.gmra.mxu1 %v58_v16 }
  0x42   :  { %212 = vmatmul.mubr.f32.gmra.mxu0 %v35_v17 }
  0x43   :  { %216 = vmatprep.mubr.f32.mxu0 %v39_v18 }
  0x46   :  { %217 = vmatmul.mubr.f32.gmra.mxu0 %v38_v19 }
  0x47   :  { %221 = vmatprep.mubr.f32.mxu0 %v42_v20 }
  0x4a   :  { %222 = vmatmul.mubr.f32.gmra.mxu0 %v41_v21 }
  0x4b   :  { %226 = vmatprep.mubr.f32.mxu0 %v45_v22 }
  0x4e   :  { %227 = vmatmul.mubr.f32.gmra.mxu0 %v44_v23 }
  0x4f   :  { %231 = vmatprep.mubr.f32.mxu0 %v48_v24 }
  0x52   :  { %232 = vmatmul.mubr.f32.gmra.mxu0 %v47_v25 }
  0x53   :  { %236 = vmatprep.mubr.f32.mxu0 %v51_v26 }
  0x56   :  { %237 = vmatmul.mubr.f32.gmra.mxu0 %v50_v27 }
  0x57   :  { %241 = vmatprep.mubr.f32.mxu0 %v54_v28 }
  0x5a   :  { %242 = vmatmul.mubr.f32.gmra.mxu0 %v53_v29 }
  0x5b   :  { %246 = vmatprep.mubr.f32.mxu0 %v57_v30 }
  0x5e   :  { %247 = vmatmul.mubr.f32.gmra.mxu0 %v56_v31 }
  0xe2   :  { %v449_v32 = vpop.f32.mrf.mxu0 }
  0xe4   :  { %v450_v33 = vpop.f32.mrf.mxu0 }
  0xe5   :  { %v563_v34 = vpop.f32.mrf.mxu1  ;;  %v451_v35 = vadd.f32 %v450_v33, %v449_v32 }
  0xe6   :  { %v452_v36 = vpop.f32.mrf.mxu0 }
  0xe7   :  { %v318_v37 = vpop.f32.mrf.mxu1 }
  0xe8   :  { %v319_v38 = vadd.f32 %v451_v35, %v318_v37  ;;  %v453_v39 = vpop.f32.mrf.mxu0 }
  0xe9   :  { %v566_v40 = vpop.f32.mrf.mxu1  ;;  %v454_v41 = vadd.f32 %v453_v39, %v452_v36 }
  0xea   :  { %397 = vst [vmem:[%s938_s2] sm:$0xff] %v319_v38  ;;  %v455_v42 = vpop.f32.mrf.mxu0 }
  0xeb   :  { %v324_v43 = vadd.f32 %v563_v34, %v454_v41  ;;  %v328_v45 = vpop.f32.mrf.mxu1 }
  0xec   :  { %v456_v44 = vpop.f32.mrf.mxu0 }
  0xed   :  { %398 = vst [vmem:[%s938_s2 + $0x8] sm:$0xff] %v324_v43  ;;  %v457_v46 = vadd.f32 %v456_v44, %v455_v42  ;;  %v569_v50 = vpop.f32.mrf.mxu1 }
  0xee   :  { %v458_v47 = vpop.f32.mrf.mxu0 }
  0xef   :  { %v329_v48 = vadd.f32 %v457_v46, %v328_v45  ;;  %v338_v55 = vpop.f32.mrf.mxu1 }
  0xf0   :  { %v459_v49 = vpop.f32.mrf.mxu0 }
  0xf1   :  { %399 = vst [vmem:[%s938_s2 + $0x10] sm:$0xff] %v329_v48  ;;  %v460_v51 = vadd.f32 %v459_v49, %v458_v47  ;;  %v572_v60 = vpop.f32.mrf.mxu1 }
  0xf2   :  { %v461_v52 = vpop.f32.mrf.mxu0 }
  0xf3   :  { %v334_v53 = vadd.f32 %v566_v40, %v460_v51  ;;  %v348_v1 = vpop.f32.mrf.mxu1 }
  0xf4   :  { %v462_v54 = vpop.f32.mrf.mxu0 }
  0xf5   :  { %400 = vst [vmem:[%s938_s2 + $0x18] sm:$0xff] %v334_v53  ;;  %v463_v56 = vadd.f32 %v462_v54, %v461_v52  ;;  %v575_v6 = vpop.f32.mrf.mxu1 }
  0xf6   :  { %v464_v57 = vpop.f32.mrf.mxu0 }
  0xf7   :  { %v339_v58 = vadd.f32 %v463_v56, %v338_v55  ;;  %v358_v11 = vpop.f32.mrf.mxu1 }
  0xf8   :  { %v465_v59 = vpop.f32.mrf.mxu0 }
  0xf9   :  { %401 = vst [vmem:[%s938_s2 + $0x20] sm:$0xff] %v339_v58  ;;  %v466_v61 = vadd.f32 %v465_v59, %v464_v57  ;;  %v578_v16 = vpop.f32.mrf.mxu1 }
  0xfa   :  { %v467_v62 = vpop.f32.mrf.mxu0 }
  0xfb   :  { %v344_v63 = vadd.f32 %v569_v50, %v466_v61  ;;  %v368_v21 = vpop.f32.mrf.mxu1 }
  0xfc   :  { %v468_v0 = vpop.f32.mrf.mxu0 }
  0xfd   :  { %402 = vst [vmem:[%s938_s2 + $0x28] sm:$0xff] %v344_v63  ;;  %v469_v2 = vadd.f32 %v468_v0, %v467_v62  ;;  %v581_v26 = vpop.f32.mrf.mxu1 }
  0xfe   :  { %v470_v3 = vpop.f32.mrf.mxu0 }
  0xff   :  { %v349_v4 = vadd.f32 %v469_v2, %v348_v1  ;;  %v378_v31 = vpop.f32.mrf.mxu1 }
 0x100   :  { %v471_v5 = vpop.f32.mrf.mxu0 }
 0x101   :  { %403 = vst [vmem:[%s938_s2 + $0x30] sm:$0xff] %v349_v4  ;;  %v472_v7 = vadd.f32 %v471_v5, %v470_v3  ;;  %v584_v36 = vpop.f32.mrf.mxu1 }
 0x102   :  { %v473_v8 = vpop.f32.mrf.mxu0 }
 0x103   :  { %v354_v9 = vadd.f32 %v572_v60, %v472_v7  ;;  %v388_v41 = vpop.f32.mrf.mxu1 }
 0x104   :  { %v474_v10 = vpop.f32.mrf.mxu0 }
 0x105   :  { %404 = vst [vmem:[%s938_s2 + $0x38] sm:$0xff] %v354_v9  ;;  %v475_v12 = vadd.f32 %v474_v10, %v473_v8 }
 0x106   :  { %v476_v13 = vpop.f32.mrf.mxu0 }
 0x107   :  { %v359_v14 = vadd.f32 %v475_v12, %v358_v11 }
 0x108   :  { %v477_v15 = vpop.f32.mrf.mxu0 }
 0x109   :  { %405 = vst [vmem:[%s938_s2 + $0x40] sm:$0xff] %v359_v14  ;;  %v478_v17 = vadd.f32 %v477_v15, %v476_v13 }
 0x10a   :  { %v479_v18 = vpop.f32.mrf.mxu0 }
 0x10b   :  { %v364_v19 = vadd.f32 %v575_v6, %v478_v17 }
 0x10c   :  { %v480_v20 = vpop.f32.mrf.mxu0 }
 0x10d   :  { %406 = vst [vmem:[%s938_s2 + $0x48] sm:$0xff] %v364_v19  ;;  %v481_v22 = vadd.f32 %v480_v20, %v479_v18 }
 0x10e   :  { %v482_v23 = vpop.f32.mrf.mxu0 }
 0x10f   :  { %v369_v24 = vadd.f32 %v481_v22, %v368_v21 }
 0x110   :  { %v483_v25 = vpop.f32.mrf.mxu0 }
 0x111   :  { %407 = vst [vmem:[%s938_s2 + $0x50] sm:$0xff] %v369_v24  ;;  %v484_v27 = vadd.f32 %v483_v25, %v482_v23 }
 0x112   :  { %v485_v28 = vpop.f32.mrf.mxu0 }
 0x113   :  { %v374_v29 = vadd.f32 %v578_v16, %v484_v27 }
 0x114   :  { %v486_v30 = vpop.f32.mrf.mxu0 }
 0x115   :  { %408 = vst [vmem:[%s938_s2 + $0x58] sm:$0xff] %v374_v29  ;;  %v487_v32 = vadd.f32 %v486_v30, %v485_v28 }
 0x116   :  { %v488_v33 = vpop.f32.mrf.mxu0 }
 0x117   :  { %v379_v34 = vadd.f32 %v487_v32, %v378_v31 }
 0x118   :  { %v489_v35 = vpop.f32.mrf.mxu0 }
 0x119   :  { %409 = vst [vmem:[%s938_s2 + $0x60] sm:$0xff] %v379_v34  ;;  %v490_v37 = vadd.f32 %v489_v35, %v488_v33 }
 0x11a   :  { %v491_v38 = vpop.f32.mrf.mxu0 }
 0x11b   :  { %v384_v39 = vadd.f32 %v581_v26, %v490_v37 }
 0x11c   :  { %v492_v40 = vpop.f32.mrf.mxu0 }
 0x11d   :  { %410 = vst [vmem:[%s938_s2 + $0x68] sm:$0xff] %v384_v39  ;;  %v493_v42 = vadd.f32 %v492_v40, %v491_v38 }
 0x11e   :  { %v494_v43 = vpop.f32.mrf.mxu0 }
 0x11f   :  { %v389_v44 = vadd.f32 %v493_v42, %v388_v41 }
 0x120   :  { %v495_v45 = vpop.f32.mrf.mxu0 }
 0x121   :  { %411 = vst [vmem:[%s938_s2 + $0x70] sm:$0xff] %v389_v44  ;;  %v496_v46 = vadd.f32 %v495_v45, %v494_v43 }
 0x123   :  { %v394_v47 = vadd.f32 %v584_v36, %v496_v46 }
 0x125   :  { %412 = vst [vmem:[%s938_s2 + $0x78] sm:$0xff] %v394_v47 }

// kernel: calc_score.3
= control target key start
LH: loop header
LB: loop body
LE: loop exit
PB: predicated region body
PF: predicated region fallthrough
CT: control target
= control target key end

     0   :  { %s1878_s1 = inlined_call_operand.vmem [shape: f32[128,128], index: 1, kind: input, shape index: {}, may-alias: {1,2}]   ;;  %s1879_s0 = inlined_call_operand.vmem [shape: f32[128,128], index: 0, kind: input, shape index: {}]   ;;  %s1880_s3 = inlined_call_operand.vmem [shape: f32[128,128], index: 3, kind: input, shape index: {}]   ;;  %s1881_s5 = inlined_call_operand.vmem [shape: f32[128,128], index: 5, kind: input, shape index: {}]   ;;  %s1882_s2 = inlined_call_operand.vmem [shape: f32[128,128], index: 2, kind: input, shape index: {}, may-alias: {1,2}]   ;;  %s1883_s4 = inlined_call_operand.vmem [shape: f32[1,128], index: 4, kind: input, shape index: {}]   ;;  %s1884_s6 = inlined_call_operand.vmem [shape: f32[1,128], index: 6, kind: input, shape index: {}]   ;;  %s1885_s7 = inlined_call_operand.vmem [shape: f32[128,128], index: 7, kind: output, shape index: {0}]   ;;  %s1886_s8 = inlined_call_operand.vmem [shape: f32[128,128], index: 8, kind: output, shape index: {1}]  }
   0x1   :  { %v95_v0 = vld [vmem:[%s1878_s1 + $0x78] sm:$0xff]  ;;  %v94_v1 = vld [vmem:[%s1878_s1 + $0x70] sm:$0xff]  ;;  %v93_v2 = vld [vmem:[%s1878_s1 + $0x68] sm:$0xff] }
   0x2   :  { %1022 = vmatprep.subr.mxu0 %v95_v0  ;;  %v92_v3 = vld [vmem:[%s1878_s1 + $0x60] sm:$0xff]  ;;  %v91_v5 = vld [vmem:[%s1878_s1 + $0x58] sm:$0xff]  ;;  %v90_v6 = vld [vmem:[%s1878_s1 + $0x50] sm:$0xff] }
   0x3   :  { %1023 = vmatpush3.msra.mxu0 %v95_v0  ;;  %v64_v4 = vld [vmem:[%s1879_s0] sm:$0xff]  ;;  %v89_v7 = vld [vmem:[%s1878_s1 + $0x48] sm:$0xff]  ;;  %v355_v8 = vld [vmem:[%s1880_s3 + $0x78] sm:$0xff] }
   0x4   :  { %1024 = vmatprep.subr.mxu0 %v94_v1  ;;  %1054 = vmatprep.mubr.f32.mxu0 %v64_v4  ;;  %v354_v9 = vld [vmem:[%s1880_s3 + $0x70] sm:$0xff]  ;;  %v88_v10 = vld [vmem:[%s1878_s1 + $0x40] sm:$0xff]  ;;  %v353_v11 = vld [vmem:[%s1880_s3 + $0x68] sm:$0xff] }
   0x5   :  { %1025 = vmatpush3.msra.mxu0 %v94_v1  ;;  %1078 = vmatprep.subr.mxu1 %v355_v8  ;;  %v87_v12 = vld [vmem:[%s1878_s1 + $0x38] sm:$0xff]  ;;  %v352_v13 = vld [vmem:[%s1880_s3 + $0x60] sm:$0xff]  ;;  %v86_v14 = vld [vmem:[%s1878_s1 + $0x30] sm:$0xff] }
   0x6   :  { %1026 = vmatprep.subr.mxu0 %v93_v2  ;;  %1079 = vmatpush3.msra.mxu1 %v355_v8  ;;  %v351_v15 = vld [vmem:[%s1880_s3 + $0x58] sm:$0xff]  ;;  %v85_v16 = vld [vmem:[%s1878_s1 + $0x28] sm:$0xff]  ;;  %v350_v17 = vld [vmem:[%s1880_s3 + $0x50] sm:$0xff] }
   0x7   :  { %1027 = vmatpush3.msra.mxu0 %v93_v2  ;;  %1080 = vmatprep.subr.mxu1 %v354_v9  ;;  %v84_v18 = vld [vmem:[%s1878_s1 + $0x20] sm:$0xff]  ;;  %v349_v19 = vld [vmem:[%s1880_s3 + $0x48] sm:$0xff]  ;;  %v83_v20 = vld [vmem:[%s1878_s1 + $0x18] sm:$0xff] }
   0x8   :  { %1028 = vmatprep.subr.mxu0 %v92_v3  ;;  %1081 = vmatpush3.msra.mxu1 %v354_v9  ;;  %v348_v21 = vld [vmem:[%s1880_s3 + $0x40] sm:$0xff]  ;;  %v82_v22 = vld [vmem:[%s1878_s1 + $0x10] sm:$0xff]  ;;  %v347_v23 = vld [vmem:[%s1880_s3 + $0x38] sm:$0xff] }
   0x9   :  { %1029 = vmatpush3.msra.mxu0 %v92_v3  ;;  %1082 = vmatprep.subr.mxu1 %v353_v11  ;;  %v81_v24 = vld [vmem:[%s1878_s1 + $0x8] sm:$0xff]  ;;  %v346_v25 = vld [vmem:[%s1880_s3 + $0x30] sm:$0xff]  ;;  %v80_v26 = vld [vmem:[%s1878_s1] sm:$0xff] }
   0xa   :  { %1030 = vmatprep.subr.mxu0 %v91_v5  ;;  %1083 = vmatpush3.msra.mxu1 %v353_v11  ;;  %v345_v27 = vld [vmem:[%s1880_s3 + $0x28] sm:$0xff]  ;;  %v1389_v29 = vld [vmem:[%s1881_s5 + $0x78] sm:$0xff]  ;;  %v66_v30 = vld [vmem:[%s1879_s0 + $0x10] sm:$0xff] }
   0xb   :  { %1031 = vmatpush3.msra.mxu0 %v91_v5  ;;  %1084 = vmatprep.subr.mxu1 %v352_v13  ;;  %v65_v28 = vld [vmem:[%s1879_s0 + $0x8] sm:$0xff]  ;;  %v1397_v31 = vld [vmem:[%s1881_s5 + $0x70] sm:$0xff]  ;;  %v344_v32 = vld [vmem:[%s1880_s3 + $0x20] sm:$0xff] }
   0xc   :  { %1032 = vmatprep.subr.mxu0 %v90_v6  ;;  %1085 = vmatpush3.msra.mxu1 %v352_v13  ;;  %v67_v33 = vld [vmem:[%s1879_s0 + $0x18] sm:$0xff]  ;;  %v1410_v34 = vld [vmem:[%s1881_s5 + $0x68] sm:$0xff]  ;;  %v68_v35 = vld [vmem:[%s1879_s0 + $0x20] sm:$0xff] }
   0xd   :  { %1033 = vmatpush3.msra.mxu0 %v90_v6  ;;  %1086 = vmatprep.subr.mxu1 %v351_v15  ;;  %v1420_v36 = vld [vmem:[%s1881_s5 + $0x60] sm:$0xff]  ;;  %v343_v37 = vld [vmem:[%s1880_s3 + $0x18] sm:$0xff]  ;;  %v69_v38 = vld [vmem:[%s1879_s0 + $0x28] sm:$0xff] }
   0xe   :  { %1034 = vmatprep.subr.mxu0 %v89_v7  ;;  %1087 = vmatpush3.msra.mxu1 %v351_v15  ;;  %v1433_v39 = vld [vmem:[%s1881_s5 + $0x58] sm:$0xff]  ;;  %v70_v40 = vld [vmem:[%s1879_s0 + $0x30] sm:$0xff]  ;;  %v1456_v44 = vld [vmem:[%s1881_s5 + $0x48] sm:$0xff] }
   0xf   :  { %1035 = vmatpush3.msra.mxu0 %v89_v7  ;;  %1088 = vmatprep.subr.mxu1 %v350_v17  ;;  %v1443_v41 = vld [vmem:[%s1881_s5 + $0x50] sm:$0xff]  ;;  %v71_v43 = vld [vmem:[%s1879_s0 + $0x38] sm:$0xff]  ;;  %v72_v45 = vld [vmem:[%s1879_s0 + $0x40] sm:$0xff] }
  0x10   :  { %1036 = vmatprep.subr.mxu0 %v88_v10  ;;  %1089 = vmatpush3.msra.mxu1 %v350_v17  ;;  %v342_v42 = vld [vmem:[%s1880_s3 + $0x10] sm:$0xff]  ;;  %v1466_v46 = vld [vmem:[%s1881_s5 + $0x40] sm:$0xff]  ;;  %v73_v47 = vld [vmem:[%s1879_s0 + $0x48] sm:$0xff] }
  0x11   :  { %1037 = vmatpush3.msra.mxu0 %v88_v10  ;;  %1090 = vmatprep.subr.mxu1 %v349_v19  ;;  %v1476_v48 = vld [vmem:[%s1881_s5 + $0x38] sm:$0xff]  ;;  %v74_v49 = vld [vmem:[%s1879_s0 + $0x50] sm:$0xff]  ;;  %v1496_v52 = vld [vmem:[%s1881_s5 + $0x28] sm:$0xff] }
  0x12   :  { %1038 = vmatprep.subr.mxu0 %v87_v12  ;;  %1091 = vmatpush3.msra.mxu1 %v349_v19  ;;  %v1486_v50 = vld [vmem:[%s1881_s5 + $0x30] sm:$0xff]  ;;  %v75_v51 = vld [vmem:[%s1879_s0 + $0x58] sm:$0xff]  ;;  %v76_v53 = vld [vmem:[%s1879_s0 + $0x60] sm:$0xff] }
  0x13   :  { %1039 = vmatpush3.msra.mxu0 %v87_v12  ;;  %1092 = vmatprep.subr.mxu1 %v348_v21  ;;  %v1506_v54 = vld [vmem:[%s1881_s5 + $0x20] sm:$0xff]  ;;  %v77_v55 = vld [vmem:[%s1879_s0 + $0x68] sm:$0xff]  ;;  %v1516_v56 = vld [vmem:[%s1881_s5 + $0x18] sm:$0xff] }
  0x14   :  { %1040 = vmatprep.subr.mxu0 %v86_v14  ;;  %1093 = vmatpush3.msra.mxu1 %v348_v21  ;;  %v78_v57 = vld [vmem:[%s1879_s0 + $0x70] sm:$0xff]  ;;  %v79_v58 = vld [vmem:[%s1879_s0 + $0x78] sm:$0xff]  ;;  %v341_v60 = vld [vmem:[%s1880_s3 + $0x8] sm:$0xff] }
  0x15   :  { %1041 = vmatpush3.msra.mxu0 %v86_v14  ;;  %1094 = vmatprep.subr.mxu1 %v347_v23  ;;  %v1531_v59 = vld [vmem:[%s1881_s5 + $0x10] sm:$0xff]  ;;  %v1541_v61 = vld [vmem:[%s1881_s5 + $0x8] sm:$0xff]  ;;  %v340_v62 = vld [vmem:[%s1880_s3] sm:$0xff] }
  0x16   :  { %1042 = vmatprep.subr.mxu0 %v85_v16  ;;  %1095 = vmatpush3.msra.mxu1 %v347_v23  ;;  %v1551_v63 = vld [vmem:[%s1881_s5] sm:$0xff]  ;;  %v277_v2 = vld [vmem:[%s1882_s2 + $0x8] sm:$0xff]  ;;  %v278_v9 = vld [vmem:[%s1882_s2 + $0x10] sm:$0xff] }
  0x17   :  { %1043 = vmatpush3.msra.mxu0 %v85_v16  ;;  %1096 = vmatprep.subr.mxu1 %v346_v25  ;;  %v276_v1 = vld [vmem:[%s1882_s2] sm:$0xff]  ;;  %v279_v10 = vld [vmem:[%s1882_s2 + $0x18] sm:$0xff]  ;;  %v282_v23 = vld [vmem:[%s1882_s2 + $0x30] sm:$0xff] }
  0x18   :  { %1044 = vmatprep.subr.mxu0 %v84_v18  ;;  %1097 = vmatpush3.msra.mxu1 %v346_v25  ;;  %v280_v15 = vld [vmem:[%s1882_s2 + $0x20] sm:$0xff] }
  0x19   :  { %1045 = vmatpush3.msra.mxu0 %v84_v18  ;;  %1098 = vmatprep.subr.mxu1 %v345_v27  ;;  %v281_v18 = vld [vmem:[%s1882_s2 + $0x28] sm:$0xff] }
  0x1a   :  { %1046 = vmatprep.subr.mxu0 %v83_v20  ;;  %1099 = vmatpush3.msra.mxu1 %v345_v27 }
  0x1b   :  { %1047 = vmatpush3.msra.mxu0 %v83_v20  ;;  %1100 = vmatprep.subr.mxu1 %v344_v32 }
  0x1c   :  { %1048 = vmatprep.subr.mxu0 %v82_v22  ;;  %1101 = vmatpush3.msra.mxu1 %v344_v32 }
  0x1d   :  { %1049 = vmatpush3.msra.mxu0 %v82_v22  ;;  %1102 = vmatprep.subr.mxu1 %v343_v37 }
  0x1e   :  { %1050 = vmatprep.subr.mxu0 %v81_v24  ;;  %1103 = vmatpush3.msra.mxu1 %v343_v37 }
  0x1f   :  { %1051 = vmatpush3.msra.mxu0 %v81_v24  ;;  %1104 = vmatprep.subr.mxu1 %v342_v42 }
  0x20   :  { %1052 = vmatprep.subr.mxu0 %v80_v26  ;;  %1105 = vmatpush3.msra.mxu1 %v342_v42 }
  0x21   :  { %1053 = vmatpush3.msra.mxu0 %v80_v26  ;;  %1106 = vmatprep.subr.mxu1 %v341_v60  ;;  %v283_v26 = vld [vmem:[%s1882_s2 + $0x38] sm:$0xff] }
  0x22   :  { %1055 = vmatmul.mubr.f32.vlgmr.msra.gmra.mxu0 %v65_v28  ;;  %1134 = vmatprep.subr.mxu0 %v1389_v29 }
  0x23   :  { %1057 = vmatprep.mubr.f32.mxu0 %v66_v30  ;;  %1135 = vmatpush3.msra.mxu0 %v1389_v29 }
  0x24   :  { %1136 = vmatprep.subr.mxu0 %v1397_v31  ;;  %1107 = vmatpush3.msra.mxu1 %v341_v60 }
  0x25   :  { %1137 = vmatpush3.msra.mxu0 %v1397_v31  ;;  %1108 = vmatprep.subr.mxu1 %v340_v62 }
  0x26   :  { %1058 = vmatmul.mubr.f32.gmra.mxu0 %v67_v33  ;;  %1138 = vmatprep.subr.mxu0 %v1410_v34 }
  0x27   :  { %1060 = vmatprep.mubr.f32.mxu0 %v68_v35  ;;  %1139 = vmatpush3.msra.mxu0 %v1410_v34 }
  0x28   :  { %1140 = vmatprep.subr.mxu0 %v1420_v36  ;;  %1109 = vmatpush3.msra.mxu1 %v340_v62 }
  0x29   :  { %1141 = vmatpush3.msra.mxu0 %v1420_v36  ;;  %1190 = vmatprep.subr.mxu1 %v1389_v29 }
  0x2a   :  { %1061 = vmatmul.mubr.f32.gmra.mxu0 %v69_v38  ;;  %1142 = vmatprep.subr.mxu0 %v1433_v39  ;;  %v286_v38 = vld [vmem:[%s1882_s2 + $0x50] sm:$0xff] }
  0x2b   :  { %1063 = vmatprep.mubr.f32.mxu0 %v70_v40  ;;  %1143 = vmatpush3.msra.mxu0 %v1433_v39  ;;  %v287_v40 = vld [vmem:[%s1882_s2 + $0x58] sm:$0xff] }
  0x2c   :  { %1144 = vmatprep.subr.mxu0 %v1443_v41 }
  0x2d   :  { %1145 = vmatpush3.msra.mxu0 %v1443_v41 }
  0x2e   :  { %1064 = vmatmul.mubr.f32.gmra.mxu0 %v71_v43  ;;  %1146 = vmatprep.subr.mxu0 %v1456_v44 }
  0x2f   :  { %1066 = vmatprep.mubr.f32.mxu0 %v72_v45  ;;  %1147 = vmatpush3.msra.mxu0 %v1456_v44 }
  0x30   :  { %1148 = vmatprep.subr.mxu0 %v1466_v46 }
  0x31   :  { %1149 = vmatpush3.msra.mxu0 %v1466_v46 }
  0x32   :  { %1067 = vmatmul.mubr.f32.gmra.mxu0 %v73_v47  ;;  %1150 = vmatprep.subr.mxu0 %v1476_v48 }
  0x33   :  { %1069 = vmatprep.mubr.f32.mxu0 %v74_v49  ;;  %1151 = vmatpush3.msra.mxu0 %v1476_v48 }
  0x34   :  { %1152 = vmatprep.subr.mxu0 %v1486_v50 }
  0x35   :  { %1153 = vmatpush3.msra.mxu0 %v1486_v50 }
  0x36   :  { %1070 = vmatmul.mubr.f32.gmra.mxu0 %v75_v51  ;;  %1154 = vmatprep.subr.mxu0 %v1496_v52  ;;  %v290_v51 = vld [vmem:[%s1882_s2 + $0x70] sm:$0xff] }
  0x37   :  { %1072 = vmatprep.mubr.f32.mxu0 %v76_v53  ;;  %1155 = vmatpush3.msra.mxu0 %v1496_v52 }
  0x38   :  { %1156 = vmatprep.subr.mxu0 %v1506_v54 }
  0x39   :  { %1157 = vmatpush3.msra.mxu0 %v1506_v54 }
  0x3a   :  { %1073 = vmatmul.mubr.f32.gmra.mxu0 %v77_v55  ;;  %1158 = vmatprep.subr.mxu0 %v1516_v56 }
  0x3b   :  { %1075 = vmatprep.mubr.f32.mxu0 %v78_v57  ;;  %1159 = vmatpush3.msra.mxu0 %v1516_v56 }
  0x3c   :  { %1160 = vmatprep.subr.mxu0 %v1531_v59 }
  0x3d   :  { %1161 = vmatpush3.msra.mxu0 %v1531_v59 }
  0x3e   :  { %1076 = vmatmul.mubr.f32.gmra.mxu0 %v79_v58  ;;  %1162 = vmatprep.subr.mxu0 %v1541_v61 }
  0x3f   :  { %1163 = vmatpush3.msra.mxu0 %v1541_v61 }
  0x40   :  { %1164 = vmatprep.subr.mxu0 %v1551_v63 }
  0x41   :  { %1165 = vmatpush3.msra.mxu0 %v1551_v63 }
  0xe2   :  { %v1056_v0 = vpop.f32.mrf.mxu0 }
  0xe3   :  { %v309_v6 = vadd.f32 %v1056_v0, %v277_v2  ;;  %v325_v7 = vmul.f32 %v1056_v0, %v277_v2 }
  0xe4   :  { %v162_v3 = vpop.f32.mrf.mxu0 }
  0xe5   :  { %v308_v4 = vadd.f32 %v276_v1, %v162_v3  ;;  %v324_v5 = vmul.f32 %v276_v1, %v162_v3 }
  0xe6   :  { %v1059_v8 = vpop.f32.mrf.mxu0 }
  0xe7   :  { %1110 = vmatprep.mubr.f32.mxu1 %v308_v4  ;;  %1166 = vmatprep.mubr.f32.mxu0 %v324_v5  ;;  %v311_v16 = vadd.f32 %v1059_v8, %v279_v10  ;;  %v327_v17 = vmul.f32 %v1059_v8, %v279_v10 }
  0xe8   :  { %v172_v11 = vpop.f32.mrf.mxu0  ;;  %1111 = vmatmul.mubr.f32.vlgmr.msra.gmra.mxu1 %v309_v6  ;;  %1167 = vmatmul.mubr.f32.vlgmr.msra.gmra.mxu0 %v325_v7 }
  0xe9   :  { %v310_v12 = vadd.f32 %v278_v9, %v172_v11  ;;  %v326_v13 = vmul.f32 %v278_v9, %v172_v11  ;;  %1206 = vmatpush3.msra.mxu1 %v1389_v29 }
  0xea   :  { %1191 = vmatprep.subr.mxu1 %v1397_v31  ;;  %v1062_v14 = vpop.f32.mrf.mxu0 }
  0xeb   :  { %1207 = vmatpush3.msra.mxu1 %v1397_v31  ;;  %1113 = vmatprep.mubr.f32.mxu1 %v310_v12  ;;  %v313_v24 = vadd.f32 %v1062_v14, %v281_v18  ;;  %v329_v25 = vmul.f32 %v1062_v14, %v281_v18  ;;  %v284_v31 = vld [vmem:[%s1882_s2 + $0x40] sm:$0xff] }
  0xec   :  { %1192 = vmatprep.subr.mxu1 %v1410_v34  ;;  %1169 = vmatprep.mubr.f32.mxu0 %v326_v13  ;;  %v182_v19 = vpop.f32.mrf.mxu0 }
  0xed   :  { %v312_v20 = vadd.f32 %v280_v15, %v182_v19  ;;  %v328_v21 = vmul.f32 %v280_v15, %v182_v19  ;;  %1114 = vmatmul.mubr.f32.gmra.mxu1 %v311_v16  ;;  %1170 = vmatmul.mubr.f32.gmra.mxu0 %v327_v17 }
  0xee   :  { %1208 = vmatpush3.msra.mxu1 %v1410_v34  ;;  %v1065_v22 = vpop.f32.mrf.mxu0  ;;  %v285_v34 = vld [vmem:[%s1882_s2 + $0x48] sm:$0xff] }
  0xef   :  { %1193 = vmatprep.subr.mxu1 %v1420_v36  ;;  %1116 = vmatprep.mubr.f32.mxu1 %v312_v20  ;;  %v315_v32 = vadd.f32 %v1065_v22, %v283_v26  ;;  %v331_v33 = vmul.f32 %v1065_v22, %v283_v26 }
  0xf0   :  { %1209 = vmatpush3.msra.mxu1 %v1420_v36  ;;  %1172 = vmatprep.mubr.f32.mxu0 %v328_v21  ;;  %v192_v27 = vpop.f32.mrf.mxu0 }
  0xf1   :  { %1194 = vmatprep.subr.mxu1 %v1433_v39  ;;  %v314_v28 = vadd.f32 %v282_v23, %v192_v27  ;;  %v330_v29 = vmul.f32 %v282_v23, %v192_v27  ;;  %1117 = vmatmul.mubr.f32.gmra.mxu1 %v313_v24 }
  0xf2   :  { %1210 = vmatpush3.msra.mxu1 %v1433_v39  ;;  %1173 = vmatmul.mubr.f32.gmra.mxu0 %v329_v25  ;;  %v1068_v30 = vpop.f32.mrf.mxu0 }
  0xf3   :  { %1195 = vmatprep.subr.mxu1 %v1443_v41  ;;  %1119 = vmatprep.mubr.f32.mxu1 %v314_v28  ;;  %v317_v39 = vadd.f32 %v1068_v30, %v285_v34 }
  0xf4   :  { %1211 = vmatpush3.msra.mxu1 %v1443_v41  ;;  %1175 = vmatprep.mubr.f32.mxu0 %v330_v29  ;;  %v202_v35 = vpop.f32.mrf.mxu0 }
  0xf5   :  { %1196 = vmatprep.subr.mxu1 %v1456_v44  ;;  %v316_v36 = vadd.f32 %v284_v31, %v202_v35  ;;  %1120 = vmatmul.mubr.f32.gmra.mxu1 %v315_v32  ;;  %v332_v58 = vmul.f32 %v284_v31, %v202_v35 }
  0xf6   :  { %1212 = vmatpush3.msra.mxu1 %v1456_v44  ;;  %1176 = vmatmul.mubr.f32.gmra.mxu0 %v331_v33  ;;  %v1071_v37 = vpop.f32.mrf.mxu0  ;;  %v288_v44 = vld [vmem:[%s1882_s2 + $0x60] sm:$0xff] }
  0xf7   :  { %1197 = vmatprep.subr.mxu1 %v1466_v46  ;;  %1122 = vmatprep.mubr.f32.mxu1 %v316_v36  ;;  %v319_v45 = vadd.f32 %v1071_v37, %v287_v40 }
  0xf8   :  { %1213 = vmatpush3.msra.mxu1 %v1466_v46  ;;  %v212_v41 = vpop.f32.mrf.mxu0  ;;  %v289_v46 = vld [vmem:[%s1882_s2 + $0x68] sm:$0xff] }
  0xf9   :  { %1198 = vmatprep.subr.mxu1 %v1476_v48  ;;  %v318_v42 = vadd.f32 %v286_v38, %v212_v41  ;;  %1123 = vmatmul.mubr.f32.gmra.mxu1 %v317_v39  ;;  %v334_v60 = vmul.f32 %v286_v38, %v212_v41 }
  0xfa   :  { %1214 = vmatpush3.msra.mxu1 %v1476_v48  ;;  %v1074_v43 = vpop.f32.mrf.mxu0 }
  0xfb   :  { %1199 = vmatprep.subr.mxu1 %v1486_v50  ;;  %1125 = vmatprep.mubr.f32.mxu1 %v318_v42  ;;  %v321_v53 = vadd.f32 %v1074_v43, %v289_v46  ;;  %v337_v0 = vmul.f32 %v1074_v43, %v289_v46 }
  0xfc   :  { %1215 = vmatpush3.msra.mxu1 %v1486_v50  ;;  %v222_v47 = vpop.f32.mrf.mxu0  ;;  %v291_v50 = vld [vmem:[%s1882_s2 + $0x78] sm:$0xff] }
  0xfd   :  { %1200 = vmatprep.subr.mxu1 %v1496_v52  ;;  %v320_v49 = vadd.f32 %v288_v44, %v222_v47  ;;  %1126 = vmatmul.mubr.f32.gmra.mxu1 %v319_v45  ;;  %v336_v62 = vmul.f32 %v288_v44, %v222_v47 }
  0xfe   :  { %1216 = vmatpush3.msra.mxu1 %v1496_v52  ;;  %v1077_v48 = vpop.f32.mrf.mxu0 }
  0xff   :  { %1201 = vmatprep.subr.mxu1 %v1506_v54  ;;  %1128 = vmatprep.mubr.f32.mxu1 %v320_v49  ;;  %v323_v52 = vadd.f32 %v1077_v48, %v291_v50  ;;  %v339_v1 = vmul.f32 %v1077_v48, %v291_v50 }
 0x100   :  { %1217 = vmatpush3.msra.mxu1 %v1506_v54  ;;  %v232_v55 = vpop.f32.mrf.mxu0  ;;  %v333_v54 = vmul.f32 %v1068_v30, %v285_v34 }
 0x101   :  { %1202 = vmatprep.subr.mxu1 %v1516_v56  ;;  %v322_v57 = vadd.f32 %v290_v51, %v232_v55  ;;  %1129 = vmatmul.mubr.f32.gmra.mxu1 %v321_v53 }
 0x102   :  { %1218 = vmatpush3.msra.mxu1 %v1516_v56  ;;  %v335_v56 = vmul.f32 %v1071_v37, %v287_v40 }
 0x103   :  { %1203 = vmatprep.subr.mxu1 %v1531_v59  ;;  %1131 = vmatprep.mubr.f32.mxu1 %v322_v57 }
 0x104   :  { %1219 = vmatpush3.msra.mxu1 %v1531_v59  ;;  %v338_v59 = vmul.f32 %v290_v51, %v232_v55 }
 0x105   :  { %1204 = vmatprep.subr.mxu1 %v1541_v61  ;;  %1132 = vmatmul.mubr.f32.gmra.mxu1 %v323_v52 }
 0x106   :  { %1220 = vmatpush3.msra.mxu1 %v1541_v61  ;;  %1178 = vmatprep.mubr.f32.mxu1 %v332_v58  ;;  %v1638_v61 = vld [vmem:[%s1883_s4] ss:$0 sm:$0xff] }
 0x107   :  { %1205 = vmatprep.subr.mxu1 %v1551_v63 }
 0x108   :  { %1221 = vmatpush3.msra.mxu1 %v1551_v63  ;;  %v1643_v63 = vld [vmem:[%s1884_s6] ss:$0 sm:$0xff] }
 0x109   :  { %1179 = vmatmul.mubr.f32.vlgmr.msra.gmra.mxu1 %v333_v54 }
 0x10a   :  { %1181 = vmatprep.mubr.f32.mxu1 %v334_v60 }
 0x10d   :  { %1182 = vmatmul.mubr.f32.gmra.mxu1 %v335_v56 }
 0x10e   :  { %1184 = vmatprep.mubr.f32.mxu1 %v336_v62 }
 0x111   :  { %1185 = vmatmul.mubr.f32.gmra.mxu1 %v337_v0 }
 0x112   :  { %1187 = vmatprep.mubr.f32.mxu1 %v338_v59 }
 0x115   :  { %1188 = vmatmul.mubr.f32.gmra.mxu1 %v339_v1 }
 0x1a8   :  { %v1112_v2 = vpop.f32.mrf.mxu1  ;;  %v1168_v3 = vpop.f32.mrf.mxu0 }
 0x1a9   :  { %v435_v4 = vadd.f32 %v1112_v2, %v1638_v61  ;;  %v603_v5 = vadd.f32 %v1168_v3, %v1643_v63 }
 0x1aa   :  { %v429_v6 = vpop.f32.mrf.mxu1  ;;  %v597_v7 = vpop.f32.mrf.mxu0 }
 0x1ab   :  { %vm677_vm0 = vcmp.ge.f32.partialorder %v435_v4, 0.0  ;;  %v693_v8 = vmul.f32 0.01, %v435_v4  ;;  %vm725_vm1 = vcmp.ge.f32.partialorder %v603_v5, 0.0  ;;  %v741_v9 = vmul.f32 0.01, %v603_v5 }
 0x1ac   :  { %v430_v10 = vadd.f32 %v1638_v61, %v429_v6  ;;  %v598_v11 = vadd.f32 %v1643_v63, %v597_v7 }
 0x1ad   :  { %v709_v12 = vsel %vm677_vm0, %v435_v4, %v693_v8  ;;  %v757_v13 = vsel %vm725_vm1, %v603_v5, %v741_v9  ;;  %v1115_v14 = vpop.f32.mrf.mxu1  ;;  %v1171_v15 = vpop.f32.mrf.mxu0 }
 0x1ae   :  { %vm676_vm2 = vcmp.ge.f32.partialorder %v430_v10, 0.0  ;;  %v692_v16 = vmul.f32 0.01, %v430_v10  ;;  %v445_v17 = vadd.f32 %v1115_v14, %v1638_v61  ;;  %v613_v18 = vadd.f32 %v1171_v15, %v1643_v63 }
 0x1af   :  { %v439_v19 = vpop.f32.mrf.mxu1  ;;  %v607_v20 = vpop.f32.mrf.mxu0  ;;  %v1651_v21 = vadd.f32 %v757_v13, %v709_v12  ;;  %vm724_vm3 = vcmp.ge.f32.partialorder %v598_v11, 0.0  ;;  %v740_v22 = vmul.f32 0.01, %v598_v11 }
 0x1b0   :  { %v440_v23 = vadd.f32 %v1638_v61, %v439_v19  ;;  %v608_v24 = vadd.f32 %v1643_v63, %v607_v20  ;;  %vm679_vm4 = vcmp.ge.f32.partialorder %v445_v17, 0.0  ;;  %v695_v25 = vmul.f32 0.01, %v445_v17 }
 0x1b1   :  { %vm727_vm5 = vcmp.ge.f32.partialorder %v613_v18, 0.0  ;;  %v743_v26 = vmul.f32 0.01, %v613_v18  ;;  %v1118_v27 = vpop.f32.mrf.mxu1  ;;  %789 = vst [vmem:[%s1885_s7 + $0x8] sm:$0xff] %v1651_v21  ;;  %v805_v37 = vmul.f32 %v1651_v21, %v1651_v21  ;;  %v708_v39 = vsel %vm676_vm2, %v430_v10, %v692_v16 }
 0x1b2   :  { %vm678_vm6 = vcmp.ge.f32.partialorder %v440_v23, 0.0  ;;  %v694_v28 = vmul.f32 0.01, %v440_v23  ;;  %vm726_vm7 = vcmp.ge.f32.partialorder %v608_v24, 0.0  ;;  %v742_v29 = vmul.f32 0.01, %v608_v24  ;;  %v1174_v30 = vpop.f32.mrf.mxu0 }
 0x1b3   :  { %v711_v31 = vsel %vm679_vm4, %v445_v17, %v695_v25  ;;  %v455_v32 = vadd.f32 %v1118_v27, %v1638_v61  ;;  %v449_v33 = vpop.f32.mrf.mxu1  ;;  %v759_v34 = vsel %vm727_vm5, %v613_v18, %v743_v26  ;;  %v623_v35 = vadd.f32 %v1174_v30, %v1643_v63  ;;  %822 = vadd.xlane.f32.xlu0 %v805_v37 }
 0x1b4   :  { %v450_v36 = vadd.f32 %v1638_v61, %v449_v33  ;;  %v617_v38 = vpop.f32.mrf.mxu0  ;;  %v756_v40 = vsel %vm724_vm3, %v598_v11, %v740_v22  ;;  %v710_v41 = vsel %vm678_vm6, %v440_v23, %v694_v28  ;;  %v758_v42 = vsel %vm726_vm7, %v608_v24, %v742_v29 }
 0x1b5   :  { %v1121_v43 = vpop.f32.mrf.mxu1  ;;  %v618_v45 = vadd.f32 %v1643_v63, %v617_v38  ;;  %vm681_vm9 = vcmp.ge.f32.partialorder %v455_v32, 0.0  ;;  %v697_v49 = vmul.f32 0.01, %v455_v32  ;;  %v1669_v53 = vadd.f32 %v759_v34, %v711_v31 }
 0x1b6   :  { %vm680_vm8 = vcmp.ge.f32.partialorder %v450_v36, 0.0  ;;  %v696_v44 = vmul.f32 0.01, %v450_v36  ;;  %v465_v46 = vadd.f32 %v1121_v43, %v1638_v61  ;;  %v1177_v47 = vpop.f32.mrf.mxu0  ;;  %vm729_vm10 = vcmp.ge.f32.partialorder %v623_v35, 0.0 }
 0x1b7   :  { %v633_v48 = vadd.f32 %v1177_v47, %v1643_v63  ;;  %v459_v51 = vpop.f32.mrf.mxu1  ;;  %v745_v50 = vmul.f32 0.01, %v623_v35  ;;  %vm728_vm11 = vcmp.ge.f32.partialorder %v618_v45, 0.0  ;;  %v744_v55 = vmul.f32 0.01, %v618_v45  ;;  %791 = vst [vmem:[%s1885_s7 + $0x18] sm:$0xff] %v1669_v53 }
 0x1b8   :  { %v627_v57 = vpop.f32.mrf.mxu0  ;;  %v712_v52 = vsel %vm680_vm8, %v450_v36, %v696_v44  ;;  %v699_v58 = vmul.f32 0.01, %v465_v46  ;;  %v460_v60 = vadd.f32 %v1638_v61, %v459_v51  ;;  %v807_v0 = vmul.f32 %v1669_v53, %v1669_v53 }
 0x1b9   :  { %v747_v54 = vmul.f32 0.01, %v633_v48  ;;  %v1124_v56 = vpop.f32.mrf.mxu1  ;;  %v760_v62 = vsel %vm728_vm11, %v618_v45, %v744_v55  ;;  %v628_v59 = vadd.f32 %v1643_v63, %v627_v57  ;;  %v1680_v1 = vadd.f32 %v756_v40, %v708_v39 }
 0x1ba   :  { %vm683_vm12 = vcmp.ge.f32.partialorder %v465_v46, 0.0  ;;  %vm731_vm13 = vcmp.ge.f32.partialorder %v633_v48, 0.0  ;;  %vm682_vm14 = vcmp.ge.f32.partialorder %v460_v60, 0.0  ;;  %v698_v2 = vmul.f32 0.01, %v460_v60  ;;  %826 = vadd.xlane.f32.xlu1 %v807_v0 }
 0x1bb   :  { %v469_v3 = vpop.f32.mrf.mxu1  ;;  %vm730_vm15 = vcmp.ge.f32.partialorder %v628_v59, 0.0  ;;  %v746_v4 = vmul.f32 0.01, %v628_v59  ;;  %v804_v5 = vmul.f32 %v1680_v1, %v1680_v1  ;;  %788 = vst [vmem:[%s1885_s7] sm:$0xff] %v1680_v1  ;;  %v713_v6 = vsel %vm681_vm9, %v455_v32, %v697_v49 }
 0x1bc   :  { %v761_v7 = vsel %vm729_vm10, %v623_v35, %v745_v50  ;;  %v1690_v8 = vadd.f32 %v758_v42, %v710_v41  ;;  %v1692_v10 = vadd.f32 %v760_v62, %v712_v52  ;;  %v715_v11 = vsel %vm683_vm12, %v465_v46, %v699_v58 }
 0x1bd   :  { %v1127_v9 = vpop.f32.mrf.mxu1  ;;  %v763_v12 = vsel %vm731_vm13, %v633_v48, %v747_v54  ;;  %v714_v13 = vsel %vm682_vm14, %v460_v60, %v698_v2  ;;  %v762_v14 = vsel %vm730_vm15, %v628_v59, %v746_v4  ;;  %820 = vadd.xlane.f32.xlu0 %v804_v5  ;;  %v1706_v18 = vadd.f32 %v761_v7, %v713_v6 }
 0x1be   :  { %v806_v15 = vmul.f32 %v1690_v8, %v1690_v8  ;;  %790 = vst [vmem:[%s1885_s7 + $0x10] sm:$0xff] %v1690_v8  ;;  %792 = vst [vmem:[%s1885_s7 + $0x20] sm:$0xff] %v1692_v10  ;;  %v808_v16 = vmul.f32 %v1692_v10, %v1692_v10  ;;  %v1708_v20 = vadd.f32 %v762_v14, %v714_v13 }
 0x1bf   :  { %v479_v17 = vpop.f32.mrf.mxu1  ;;  %v1710_v22 = vadd.f32 %v763_v12, %v715_v11  ;;  %793 = vst [vmem:[%s1885_s7 + $0x28] sm:$0xff] %v1706_v18  ;;  %v809_v23 = vmul.f32 %v1706_v18, %v1706_v18  ;;  %v475_v26 = vadd.f32 %v1124_v56, %v1638_v61  ;;  %v470_v27 = vadd.f32 %v1638_v61, %v469_v3 }
 0x1c0   :  { %824 = vadd.xlane.f32.xlu1 %v806_v15  ;;  %794 = vst [vmem:[%s1885_s7 + $0x30] sm:$0xff] %v1708_v20  ;;  %v810_v24 = vmul.f32 %v1708_v20, %v1708_v20  ;;  %v485_v28 = vadd.f32 %v1127_v9, %v1638_v61  ;;  %v480_v29 = vadd.f32 %v1638_v61, %v479_v17 }
 0x1c1   :  { %v1130_v19 = vpop.f32.mrf.mxu1  ;;  %828 = vadd.xlane.f32.xlu0 %v808_v16  ;;  %795 = vst [vmem:[%s1885_s7 + $0x38] sm:$0xff] %v1710_v22  ;;  %v811_v31 = vmul.f32 %v1710_v22, %v1710_v22  ;;  %vm685_vm0 = vcmp.ge.f32.partialorder %v475_v26, 0.0  ;;  %v701_v33 = vmul.f32 0.01, %v475_v26  ;;  %v700_v34 = vmul.f32 0.01, %v470_v27 }
 0x1c2   :  { %v703_v35 = vmul.f32 0.01, %v485_v28  ;;  %v702_v36 = vmul.f32 0.01, %v480_v29  ;;  %vm684_vm1 = vcmp.ge.f32.partialorder %v470_v27, 0.0  ;;  %vm687_vm2 = vcmp.ge.f32.partialorder %v485_v28, 0.0 }
 0x1c3   :  { %v489_v25 = vpop.f32.mrf.mxu1  ;;  %vm686_vm3 = vcmp.ge.f32.partialorder %v480_v29, 0.0  ;;  %v495_v39 = vadd.f32 %v1130_v19, %v1638_v61  ;;  %v717_v44 = vsel %vm685_vm0, %v475_v26, %v701_v33  ;;  %v716_v45 = vsel %vm684_vm1, %v470_v27, %v700_v34 }
 0x1c4   :  { %830 = vadd.xlane.f32.xlu1 %v809_v23  ;;  %v490_v40 = vadd.f32 %v1638_v61, %v489_v25  ;;  %v719_v46 = vsel %vm687_vm2, %v485_v28, %v703_v35  ;;  %v718_v47 = vsel %vm686_vm3, %v480_v29, %v702_v36 }
 0x1c5   :  { %v1133_v30 = vpop.f32.mrf.mxu1  ;;  %832 = vadd.xlane.f32.xlu0 %v810_v24  ;;  %vm689_vm6 = vcmp.ge.f32.partialorder %v495_v39, 0.0  ;;  %v705_v55 = vmul.f32 0.01, %v495_v39 }
 0x1c6   :  { %vm688_vm7 = vcmp.ge.f32.partialorder %v490_v40, 0.0  ;;  %v704_v56 = vmul.f32 0.01, %v490_v40  ;;  %v505_v62 = vadd.f32 %v1133_v30, %v1638_v61 }
 0x1c7   :  { %v499_v32 = vpop.f32.mrf.mxu1  ;;  %v721_v6 = vsel %vm689_vm6, %v495_v39, %v705_v55 }
 0x1c8   :  { %834 = vadd.xlane.f32.xlu1 %v811_v31  ;;  %v500_v7 = vadd.f32 %v1638_v61, %v499_v32  ;;  %v720_v16 = vsel %vm688_vm7, %v490_v40, %v704_v56  ;;  %v707_v61 = vmul.f32 0.01, %v505_v62  ;;  %vm691_vm12 = vcmp.ge.f32.partialorder %v505_v62, 0.0 }
 0x1c9   :  { %v1180_v37 = vpop.f32.mrf.mxu1 }
 0x1ca   :  { %v643_v38 = vadd.f32 %v1180_v37, %v1643_v63  ;;  %v706_v27 = vmul.f32 0.01, %v500_v7  ;;  %vm690_vm14 = vcmp.ge.f32.partialorder %v500_v7, 0.0  ;;  %v723_v36 = vsel %vm691_vm12, %v505_v62, %v707_v61 }
 0x1cb   :  { %v637_v41 = vpop.f32.mrf.mxu1 }
 0x1cc   :  { %vm733_vm4 = vcmp.ge.f32.partialorder %v643_v38, 0.0  ;;  %v749_v42 = vmul.f32 0.01, %v643_v38  ;;  %v638_v43 = vadd.f32 %v1643_v63, %v637_v41  ;;  %v722_v40 = vsel %vm690_vm14, %v500_v7, %v706_v27 }
 0x1cd   :  { %v1183_v49 = vpop.f32.mrf.mxu1 }
 0x1ce   :  { %v765_v48 = vsel %vm733_vm4, %v643_v38, %v749_v42  ;;  %vm732_vm5 = vcmp.ge.f32.partialorder %v638_v43, 0.0  ;;  %v748_v51 = vmul.f32 0.01, %v638_v43  ;;  %v653_v50 = vadd.f32 %v1183_v49, %v1643_v63 }
 0x1cf   :  { %v647_v57 = vpop.f32.mrf.mxu1  ;;  %v1740_v52 = vadd.f32 %v765_v48, %v717_v44 }
 0x1d0   :  { %v764_v58 = vsel %vm732_vm5, %v638_v43, %v748_v51  ;;  %vm735_vm8 = vcmp.ge.f32.partialorder %v653_v50, 0.0  ;;  %v751_v54 = vmul.f32 0.01, %v653_v50  ;;  %v648_v60 = vadd.f32 %v1643_v63, %v647_v57 }
 0x1d1   :  { %v1186_v0 = vpop.f32.mrf.mxu1  ;;  %v813_v59 = vmul.f32 %v1740_v52, %v1740_v52  ;;  %797 = vst [vmem:[%s1885_s7 + $0x48] sm:$0xff] %v1740_v52  ;;  %v1750_v2 = vadd.f32 %v764_v58, %v716_v45 }
 0x1d2   :  { %v767_v3 = vsel %vm735_vm8, %v653_v50, %v751_v54  ;;  %vm734_vm9 = vcmp.ge.f32.partialorder %v648_v60, 0.0  ;;  %v750_v4 = vmul.f32 0.01, %v648_v60  ;;  %v663_v5 = vadd.f32 %v1186_v0, %v1643_v63 }
 0x1d3   :  { %838 = vadd.xlane.f32.xlu1 %v813_v59  ;;  %v657_v9 = vpop.f32.mrf.mxu1  ;;  %v812_v11 = vmul.f32 %v1750_v2, %v1750_v2  ;;  %796 = vst [vmem:[%s1885_s7 + $0x40] sm:$0xff] %v1750_v2  ;;  %v1761_v12 = vadd.f32 %v767_v3, %v719_v46 }
 0x1d4   :  { %v766_v13 = vsel %vm734_vm9, %v648_v60, %v750_v4  ;;  %vm737_vm10 = vcmp.ge.f32.partialorder %v663_v5, 0.0  ;;  %v753_v14 = vmul.f32 0.01, %v663_v5  ;;  %v658_v15 = vadd.f32 %v1643_v63, %v657_v9 }
 0x1d5   :  { %v1189_v17 = vpop.f32.mrf.mxu1  ;;  %836 = vadd.xlane.f32.xlu0 %v812_v11  ;;  %v815_v19 = vmul.f32 %v1761_v12, %v1761_v12  ;;  %799 = vst [vmem:[%s1885_s7 + $0x58] sm:$0xff] %v1761_v12  ;;  %v1771_v23 = vadd.f32 %v766_v13, %v718_v47 }
 0x1d6   :  { %v769_v24 = vsel %vm737_vm10, %v663_v5, %v753_v14  ;;  %vm736_vm11 = vcmp.ge.f32.partialorder %v658_v15, 0.0  ;;  %v752_v25 = vmul.f32 0.01, %v658_v15  ;;  %v673_v26 = vadd.f32 %v1189_v17, %v1643_v63 }
 0x1d7   :  { %842 = vadd.xlane.f32.xlu1 %v815_v19  ;;  %v667_v28 = vpop.f32.mrf.mxu1  ;;  %798 = vst [vmem:[%s1885_s7 + $0x50] sm:$0xff] %v1771_v23  ;;  %v814_v29 = vmul.f32 %v1771_v23, %v1771_v23  ;;  %v1780_v30 = vadd.f32 %v769_v24, %v721_v6 }
 0x1d8   :  { %v768_v31 = vsel %vm736_vm11, %v658_v15, %v752_v25  ;;  %vm739_vm13 = vcmp.ge.f32.partialorder %v673_v26, 0.0  ;;  %v755_v32 = vmul.f32 0.01, %v673_v26  ;;  %v668_v33 = vadd.f32 %v1643_v63, %v667_v28 }
 0x1d9   :  { %840 = vadd.xlane.f32.xlu0 %v814_v29  ;;  %v817_v34 = vmul.f32 %v1780_v30, %v1780_v30  ;;  %801 = vst [vmem:[%s1885_s7 + $0x68] sm:$0xff] %v1780_v30  ;;  %v1789_v35 = vadd.f32 %v768_v31, %v720_v16 }
 0x1da   :  { %v771_v37 = vsel %vm739_vm13, %v673_v26, %v755_v32  ;;  %vm738_vm15 = vcmp.ge.f32.partialorder %v668_v33, 0.0  ;;  %v754_v38 = vmul.f32 0.01, %v668_v33 }
 0x1db   :  { %846 = vadd.xlane.f32.xlu1 %v817_v34  ;;  %800 = vst [vmem:[%s1885_s7 + $0x60] sm:$0xff] %v1789_v35  ;;  %v816_v63 = vmul.f32 %v1789_v35, %v1789_v35  ;;  %v1798_v39 = vadd.f32 %v771_v37, %v723_v36 }
 0x1dc   :  { %v770_v41 = vsel %vm738_vm15, %v668_v33, %v754_v38 }
 0x1dd   :  { %844 = vadd.xlane.f32.xlu0 %v816_v63  ;;  %v819_v42 = vmul.f32 %v1798_v39, %v1798_v39  ;;  %803 = vst [vmem:[%s1885_s7 + $0x78] sm:$0xff] %v1798_v39  ;;  %v1806_v43 = vadd.f32 %v770_v41, %v722_v40 }
 0x1df   :  { %850 = vadd.xlane.f32.xlu1 %v819_v42  ;;  %v818_v44 = vmul.f32 %v1806_v43, %v1806_v43  ;;  %802 = vst [vmem:[%s1885_s7 + $0x70] sm:$0xff] %v1806_v43 }
 0x1e1   :  { %848 = vadd.xlane.f32.xlu0 %v818_v44 }
 0x23c   :  { %v823_v45 = vpop.xlane.xlu0 %822 }
 0x23d   :  { %v853_v46 = vmax.f32 %v823_v45, 1e-24 }
 0x23f   :  { %1222 = vrsqrt.f32 %v853_v46 }
 0x243   :  { %v827_v47 = vpop.xlane.xlu1 %826 }
 0x244   :  { %v855_v49 = vmax.f32 %v827_v47, 1e-24 }
 0x246   :  { %v821_v48 = vpop.xlane.xlu0 %820  ;;  %1224 = vrsqrt.f32 %v855_v49 }
 0x247   :  { %v852_v51 = vmax.f32 %v821_v48, 1e-24 }
 0x249   :  { %1226 = vrsqrt.f32 %v852_v51  ;;  %v825_v50 = vpop.xlane.xlu1 %824 }
 0x24a   :  { %v854_v55 = vmax.f32 %v825_v50, 1e-24  ;;  %v829_v57 = vpop.xlane.xlu0 %828 }
 0x24b   :  { %v856_v58 = vmax.f32 %v829_v57, 1e-24 }
 0x24c   :  { %1228 = vrsqrt.f32 %v854_v55  ;;  %v1223_v60 = vpop.eup %1222 }
 0x24d   :  { %1230 = vrsqrt.f32 %v856_v58  ;;  %v831_v54 = vpop.xlane.xlu1 %830  ;;  %v885_v0 = vmul.f32 %v1223_v60, %v1651_v21 }
 0x24e   :  { %v857_v56 = vmax.f32 %v831_v54, 1e-24  ;;  %v833_v62 = vpop.xlane.xlu0 %832 }
 0x24f   :  { %v858_v59 = vmax.f32 %v833_v62, 1e-24  ;;  %901 = vst [vmem:[%s1886_s8 + $0x8] sm:$0xff] %v885_v0 }
 0x250   :  { %1232 = vrsqrt.f32 %v857_v56 }
 0x251   :  { %1234 = vrsqrt.f32 %v858_v59  ;;  %v835_v3 = vpop.xlane.xlu1 %834 }
 0x252   :  { %v859_v4 = vmax.f32 %v835_v3, 1e-24 }
 0x253   :  { %v1225_v5 = vpop.eup %1224 }
 0x254   :  { %1236 = vrsqrt.f32 %v859_v4  ;;  %v887_v6 = vmul.f32 %v1225_v5, %v1669_v53 }
 0x256   :  { %v1227_v7 = vpop.eup %1226  ;;  %903 = vst [vmem:[%s1886_s8 + $0x18] sm:$0xff] %v887_v6 }
 0x257   :  { %v884_v21 = vmul.f32 %v1227_v7, %v1680_v1 }
 0x259   :  { %v1229_v9 = vpop.eup %1228  ;;  %900 = vst [vmem:[%s1886_s8] sm:$0xff] %v884_v21 }
 0x25a   :  { %v1231_v11 = vpop.eup %1230  ;;  %v886_v13 = vmul.f32 %v1229_v9, %v1690_v8 }
 0x25b   :  { %v888_v14 = vmul.f32 %v1231_v11, %v1692_v10 }
 0x25c   :  { %v839_v15 = vpop.xlane.xlu1 %838  ;;  %902 = vst [vmem:[%s1886_s8 + $0x10] sm:$0xff] %v886_v13 }
 0x25d   :  { %v861_v53 = vmax.f32 %v839_v15, 1e-24  ;;  %v1233_v16 = vpop.eup %1232  ;;  %904 = vst [vmem:[%s1886_s8 + $0x20] sm:$0xff] %v888_v14 }
 0x25e   :  { %v837_v1 = vpop.xlane.xlu0 %836  ;;  %v1235_v61 = vpop.eup %1234  ;;  %v889_v17 = vmul.f32 %v1233_v16, %v1706_v18 }
 0x25f   :  { %1238 = vrsqrt.f32 %v861_v53  ;;  %v860_v19 = vmax.f32 %v837_v1, 1e-24  ;;  %v890_v8 = vmul.f32 %v1235_v61, %v1708_v20 }
 0x260   :  { %v843_v10 = vpop.xlane.xlu1 %842  ;;  %905 = vst [vmem:[%s1886_s8 + $0x28] sm:$0xff] %v889_v17 }
 0x261   :  { %1240 = vrsqrt.f32 %v860_v19  ;;  %v863_v24 = vmax.f32 %v843_v10, 1e-24  ;;  %v1237_v25 = vpop.eup %1236  ;;  %906 = vst [vmem:[%s1886_s8 + $0x30] sm:$0xff] %v890_v8 }
 0x262   :  { %v841_v26 = vpop.xlane.xlu0 %840  ;;  %v891_v27 = vmul.f32 %v1237_v25, %v1710_v22 }
 0x263   :  { %1242 = vrsqrt.f32 %v863_v24  ;;  %v862_v18 = vmax.f32 %v841_v26, 1e-24 }
 0x264   :  { %v847_v28 = vpop.xlane.xlu1 %846  ;;  %907 = vst [vmem:[%s1886_s8 + $0x38] sm:$0xff] %v891_v27 }
 0x265   :  { %1244 = vrsqrt.f32 %v862_v18  ;;  %v865_v20 = vmax.f32 %v847_v28, 1e-24 }
 0x266   :  { %v845_v29 = vpop.xlane.xlu0 %844 }
 0x267   :  { %1246 = vrsqrt.f32 %v865_v20  ;;  %v864_v31 = vmax.f32 %v845_v29, 1e-24 }
 0x268   :  { %v851_v32 = vpop.xlane.xlu1 %850 }
 0x269   :  { %1248 = vrsqrt.f32 %v864_v31  ;;  %v867_v33 = vmax.f32 %v851_v32, 1e-24 }
 0x26a   :  { %v849_v34 = vpop.xlane.xlu0 %848 }
 0x26b   :  { %1250 = vrsqrt.f32 %v867_v33  ;;  %v866_v36 = vmax.f32 %v849_v34, 1e-24 }
 0x26c   :  { %v1239_v37 = vpop.eup %1238 }
 0x26d   :  { %v893_v22 = vmul.f32 %v1239_v37, %v1740_v52  ;;  %1252 = vrsqrt.f32 %v866_v36 }
 0x26e   :  { %v1241_v38 = vpop.eup %1240 }
 0x26f   :  { %909 = vst [vmem:[%s1886_s8 + $0x48] sm:$0xff] %v893_v22  ;;  %v892_v63 = vmul.f32 %v1241_v38, %v1750_v2 }
 0x270   :  { %v1243_v40 = vpop.eup %1242 }
 0x271   :  { %908 = vst [vmem:[%s1886_s8 + $0x40] sm:$0xff] %v892_v63  ;;  %v895_v41 = vmul.f32 %v1243_v40, %v1761_v12 }
 0x272   :  { %v1245_v42 = vpop.eup %1244 }
 0x273   :  { %911 = vst [vmem:[%s1886_s8 + $0x58] sm:$0xff] %v895_v41  ;;  %v894_v52 = vmul.f32 %v1245_v42, %v1771_v23 }
 0x274   :  { %v1247_v44 = vpop.eup %1246 }
 0x275   :  { %910 = vst [vmem:[%s1886_s8 + $0x50] sm:$0xff] %v894_v52  ;;  %v897_v2 = vmul.f32 %v1247_v44, %v1780_v30 }
 0x276   :  { %v1249_v45 = vpop.eup %1248 }
 0x277   :  { %913 = vst [vmem:[%s1886_s8 + $0x68] sm:$0xff] %v897_v2  ;;  %v896_v12 = vmul.f32 %v1249_v45, %v1789_v35 }
 0x278   :  { %v1251_v46 = vpop.eup %1250 }
 0x279   :  { %912 = vst [vmem:[%s1886_s8 + $0x60] sm:$0xff] %v896_v12  ;;  %v899_v23 = vmul.f32 %v1251_v46, %v1798_v39 }
 0x27a   :  { %v1253_v47 = vpop.eup %1252 }
 0x27b   :  { %915 = vst [vmem:[%s1886_s8 + $0x78] sm:$0xff] %v899_v23  ;;  %v898_v30 = vmul.f32 %v1253_v47, %v1806_v43 }
 0x27d   :  { %914 = vst [vmem:[%s1886_s8 + $0x70] sm:$0xff] %v898_v30 }

// kernel: calc_score.4
= control target key start
LH: loop header
LB: loop body
LE: loop exit
PB: predicated region body
PF: predicated region fallthrough
CT: control target
= control target key end

     0   :  { %s1874_s0 = inlined_call_operand.vmem [shape: f32[128,128], index: 0, kind: input, shape index: {}]   ;;  %s1875_s1 = inlined_call_operand.vmem [shape: f32[128,128], index: 1, kind: input, shape index: {}, may-alias: {1,2}]   ;;  %s1876_s2 = inlined_call_operand.vmem [shape: f32[128,128], index: 2, kind: input, shape index: {}, may-alias: {1,2}]   ;;  %s1877_s3 = inlined_call_operand.vmem [shape: f32[128,128], index: 3, kind: input, shape index: {}]   ;;  %s1878_s4 = inlined_call_operand.vmem [shape: f32[1,128], index: 4, kind: input, shape index: {}]   ;;  %s1879_s5 = inlined_call_operand.vmem [shape: f32[128,128], index: 5, kind: input, shape index: {}]   ;;  %s1880_s6 = inlined_call_operand.vmem [shape: f32[1,128], index: 6, kind: input, shape index: {}]   ;;  %s1881_s7 = inlined_call_operand.hbm [shape: f32[128,128], index: 7, kind: output, shape index: {0}]   ;;  %s1882_s8 = inlined_call_operand.vmem [shape: f32[128,128], index: 8, kind: output, shape index: {1}]  }
   0x1   :  { %v96_v0 = vld [vmem:[%s1875_s1 + $0x78] sm:$0xff]  ;;  %v95_v1 = vld [vmem:[%s1875_s1 + $0x70] sm:$0xff]  ;;  %v94_v2 = vld [vmem:[%s1875_s1 + $0x68] sm:$0xff] }
   0x2   :  { %1035 = vmatprep.subr.mxu0 %v96_v0  ;;  %v93_v3 = vld [vmem:[%s1875_s1 + $0x60] sm:$0xff]  ;;  %v92_v5 = vld [vmem:[%s1875_s1 + $0x58] sm:$0xff]  ;;  %v91_v6 = vld [vmem:[%s1875_s1 + $0x50] sm:$0xff] }
   0x3   :  { %1036 = vmatpush3.msra.mxu0 %v96_v0  ;;  %v65_v4 = vld [vmem:[%s1874_s0] sm:$0xff]  ;;  %v90_v7 = vld [vmem:[%s1875_s1 + $0x48] sm:$0xff]  ;;  %v356_v8 = vld [vmem:[%s1877_s3 + $0x78] sm:$0xff] }
   0x4   :  { %1037 = vmatprep.subr.mxu0 %v95_v1  ;;  %1067 = vmatprep.mubr.f32.mxu0 %v65_v4  ;;  %v355_v9 = vld [vmem:[%s1877_s3 + $0x70] sm:$0xff]  ;;  %v89_v10 = vld [vmem:[%s1875_s1 + $0x40] sm:$0xff]  ;;  %v354_v11 = vld [vmem:[%s1877_s3 + $0x68] sm:$0xff] }
   0x5   :  { %1038 = vmatpush3.msra.mxu0 %v95_v1  ;;  %1091 = vmatprep.subr.mxu1 %v356_v8  ;;  %v88_v12 = vld [vmem:[%s1875_s1 + $0x38] sm:$0xff]  ;;  %v353_v13 = vld [vmem:[%s1877_s3 + $0x60] sm:$0xff]  ;;  %v87_v14 = vld [vmem:[%s1875_s1 + $0x30] sm:$0xff] }
   0x6   :  { %1039 = vmatprep.subr.mxu0 %v94_v2  ;;  %1092 = vmatpush3.msra.mxu1 %v356_v8  ;;  %v352_v15 = vld [vmem:[%s1877_s3 + $0x58] sm:$0xff]  ;;  %v86_v16 = vld [vmem:[%s1875_s1 + $0x28] sm:$0xff]  ;;  %v351_v17 = vld [vmem:[%s1877_s3 + $0x50] sm:$0xff] }
   0x7   :  { %1040 = vmatpush3.msra.mxu0 %v94_v2  ;;  %1093 = vmatprep.subr.mxu1 %v355_v9 }
   0x8   :  { %1041 = vmatprep.subr.mxu0 %v93_v3  ;;  %1094 = vmatpush3.msra.mxu1 %v355_v9 }
   0x9   :  { %1042 = vmatpush3.msra.mxu0 %v93_v3  ;;  %1095 = vmatprep.subr.mxu1 %v354_v11 }
   0xa   :  { %1043 = vmatprep.subr.mxu0 %v92_v5  ;;  %1096 = vmatpush3.msra.mxu1 %v354_v11 }
   0xb   :  { %1044 = vmatpush3.msra.mxu0 %v92_v5  ;;  %1097 = vmatprep.subr.mxu1 %v353_v13 }
   0xc   :  { %1045 = vmatprep.subr.mxu0 %v91_v6  ;;  %1098 = vmatpush3.msra.mxu1 %v353_v13 }
   0xd   :  { %1046 = vmatpush3.msra.mxu0 %v91_v6  ;;  %1099 = vmatprep.subr.mxu1 %v352_v15 }
   0xe   :  { %1047 = vmatprep.subr.mxu0 %v90_v7 }
   0xf   :  { %1048 = vmatpush3.msra.mxu0 %v90_v7 }
  0x10   :  { %1049 = vmatprep.subr.mxu0 %v89_v10 }
  0x11   :  { %1050 = vmatpush3.msra.mxu0 %v89_v10 }
  0x12   :  { %1051 = vmatprep.subr.mxu0 %v88_v12 }
  0x13   :  { %1052 = vmatpush3.msra.mxu0 %v88_v12 }
  0x14   :  { %1053 = vmatprep.subr.mxu0 %v87_v14 }
  0x15   :  { %14 = vsyncpa [#allocation4], 0  ;;  %1054 = vmatpush3.msra.mxu0 %v87_v14  ;;  %v85_v18 = vld [vmem:[%s1875_s1 + $0x20] sm:$0xff]  ;;  %1100 = vmatpush3.msra.mxu1 %v352_v15  ;;  %v350_v19 = vld [vmem:[%s1877_s3 + $0x48] sm:$0xff] }
  0x16   :  { %1055 = vmatprep.subr.mxu0 %v86_v16  ;;  %1101 = vmatprep.subr.mxu1 %v351_v17  ;;  %v84_v20 = vld [vmem:[%s1875_s1 + $0x18] sm:$0xff]  ;;  %v349_v21 = vld [vmem:[%s1877_s3 + $0x40] sm:$0xff]  ;;  %v83_v22 = vld [vmem:[%s1875_s1 + $0x10] sm:$0xff] }
  0x17   :  { %1056 = vmatpush3.msra.mxu0 %v86_v16  ;;  %1102 = vmatpush3.msra.mxu1 %v351_v17  ;;  %v348_v23 = vld [vmem:[%s1877_s3 + $0x38] sm:$0xff]  ;;  %v82_v24 = vld [vmem:[%s1875_s1 + $0x8] sm:$0xff]  ;;  %v347_v25 = vld [vmem:[%s1877_s3 + $0x30] sm:$0xff] }
  0x18   :  { %1057 = vmatprep.subr.mxu0 %v85_v18  ;;  %1103 = vmatprep.subr.mxu1 %v350_v19  ;;  %v81_v26 = vld [vmem:[%s1875_s1] sm:$0xff]  ;;  %v346_v27 = vld [vmem:[%s1877_s3 + $0x28] sm:$0xff]  ;;  %v1430_v29 = vld [vmem:[%s1879_s5 + $0x78] sm:$0xff] }
  0x19   :  { %1058 = vmatpush3.msra.mxu0 %v85_v18  ;;  %1104 = vmatpush3.msra.mxu1 %v350_v19  ;;  %v66_v28 = vld [vmem:[%s1874_s0 + $0x8] sm:$0xff]  ;;  %v67_v30 = vld [vmem:[%s1874_s0 + $0x10] sm:$0xff]  ;;  %v345_v32 = vld [vmem:[%s1877_s3 + $0x20] sm:$0xff] }
  0x1a   :  { %1059 = vmatprep.subr.mxu0 %v84_v20  ;;  %1105 = vmatprep.subr.mxu1 %v349_v21  ;;  %v1438_v31 = vld [vmem:[%s1879_s5 + $0x70] sm:$0xff]  ;;  %v68_v33 = vld [vmem:[%s1874_s0 + $0x18] sm:$0xff]  ;;  %v1451_v34 = vld [vmem:[%s1879_s5 + $0x68] sm:$0xff] }
  0x1b   :  { %1060 = vmatpush3.msra.mxu0 %v84_v20  ;;  %1106 = vmatpush3.msra.mxu1 %v349_v21  ;;  %v69_v35 = vld [vmem:[%s1874_s0 + $0x20] sm:$0xff]  ;;  %v344_v37 = vld [vmem:[%s1877_s3 + $0x18] sm:$0xff]  ;;  %v70_v38 = vld [vmem:[%s1874_s0 + $0x28] sm:$0xff] }
  0x1c   :  { %1061 = vmatprep.subr.mxu0 %v83_v22  ;;  %1107 = vmatprep.subr.mxu1 %v348_v23  ;;  %v1461_v36 = vld [vmem:[%s1879_s5 + $0x60] sm:$0xff]  ;;  %v1474_v39 = vld [vmem:[%s1879_s5 + $0x58] sm:$0xff]  ;;  %v71_v40 = vld [vmem:[%s1874_s0 + $0x30] sm:$0xff] }
  0x1d   :  { %1062 = vmatpush3.msra.mxu0 %v83_v22  ;;  %1108 = vmatpush3.msra.mxu1 %v348_v23  ;;  %v1484_v41 = vld [vmem:[%s1879_s5 + $0x50] sm:$0xff]  ;;  %v72_v43 = vld [vmem:[%s1874_s0 + $0x38] sm:$0xff]  ;;  %v1497_v44 = vld [vmem:[%s1879_s5 + $0x48] sm:$0xff] }
  0x1e   :  { %1063 = vmatprep.subr.mxu0 %v82_v24  ;;  %1109 = vmatprep.subr.mxu1 %v347_v25  ;;  %v343_v42 = vld [vmem:[%s1877_s3 + $0x10] sm:$0xff]  ;;  %v73_v45 = vld [vmem:[%s1874_s0 + $0x40] sm:$0xff]  ;;  %v74_v47 = vld [vmem:[%s1874_s0 + $0x48] sm:$0xff] }
  0x1f   :  { %1064 = vmatpush3.msra.mxu0 %v82_v24  ;;  %1110 = vmatpush3.msra.mxu1 %v347_v25  ;;  %v1507_v46 = vld [vmem:[%s1879_s5 + $0x40] sm:$0xff]  ;;  %v1517_v48 = vld [vmem:[%s1879_s5 + $0x38] sm:$0xff]  ;;  %v75_v49 = vld [vmem:[%s1874_s0 + $0x50] sm:$0xff] }
  0x20   :  { %1065 = vmatprep.subr.mxu0 %v81_v26  ;;  %1111 = vmatprep.subr.mxu1 %v346_v27  ;;  %v1527_v50 = vld [vmem:[%s1879_s5 + $0x30] sm:$0xff]  ;;  %v76_v51 = vld [vmem:[%s1874_s0 + $0x58] sm:$0xff]  ;;  %v1537_v52 = vld [vmem:[%s1879_s5 + $0x28] sm:$0xff] }
  0x21   :  { %1066 = vmatpush3.msra.mxu0 %v81_v26  ;;  %1112 = vmatpush3.msra.mxu1 %v346_v27  ;;  %v77_v53 = vld [vmem:[%s1874_s0 + $0x60] sm:$0xff]  ;;  %v78_v55 = vld [vmem:[%s1874_s0 + $0x68] sm:$0xff]  ;;  %v1557_v56 = vld [vmem:[%s1879_s5 + $0x18] sm:$0xff] }
  0x22   :  { %1068 = vmatmul.mubr.f32.vlgmr.msra.gmra.mxu0 %v66_v28  ;;  %1147 = vmatprep.subr.mxu0 %v1430_v29  ;;  %v1547_v54 = vld [vmem:[%s1879_s5 + $0x20] sm:$0xff]  ;;  %v79_v57 = vld [vmem:[%s1874_s0 + $0x70] sm:$0xff]  ;;  %v80_v58 = vld [vmem:[%s1874_s0 + $0x78] sm:$0xff] }
  0x23   :  { %1070 = vmatprep.mubr.f32.mxu0 %v67_v30  ;;  %1148 = vmatpush3.msra.mxu0 %v1430_v29  ;;  %v1572_v59 = vld [vmem:[%s1879_s5 + $0x10] sm:$0xff]  ;;  %v342_v60 = vld [vmem:[%s1877_s3 + $0x8] sm:$0xff]  ;;  %v341_v62 = vld [vmem:[%s1877_s3] sm:$0xff] }
  0x24   :  { %1149 = vmatprep.subr.mxu0 %v1438_v31  ;;  %1113 = vmatprep.subr.mxu1 %v345_v32  ;;  %v1582_v61 = vld [vmem:[%s1879_s5 + $0x8] sm:$0xff]  ;;  %v1592_v63 = vld [vmem:[%s1879_s5] sm:$0xff]  ;;  %v279_v9 = vld [vmem:[%s1876_s2 + $0x10] sm:$0xff] }
  0x25   :  { %1150 = vmatpush3.msra.mxu0 %v1438_v31  ;;  %1114 = vmatpush3.msra.mxu1 %v345_v32  ;;  %v277_v1 = vld [vmem:[%s1876_s2] sm:$0xff]  ;;  %v278_v2 = vld [vmem:[%s1876_s2 + $0x8] sm:$0xff]  ;;  %v280_v10 = vld [vmem:[%s1876_s2 + $0x18] sm:$0xff] }
  0x26   :  { %1071 = vmatmul.mubr.f32.gmra.mxu0 %v68_v33  ;;  %1151 = vmatprep.subr.mxu0 %v1451_v34  ;;  %v281_v15 = vld [vmem:[%s1876_s2 + $0x20] sm:$0xff]  ;;  %v282_v18 = vld [vmem:[%s1876_s2 + $0x28] sm:$0xff]  ;;  %v283_v23 = vld [vmem:[%s1876_s2 + $0x30] sm:$0xff] }
  0x27   :  { %1073 = vmatprep.mubr.f32.mxu0 %v69_v35  ;;  %1152 = vmatpush3.msra.mxu0 %v1451_v34  ;;  %v284_v26 = vld [vmem:[%s1876_s2 + $0x38] sm:$0xff] }
  0x28   :  { %1153 = vmatprep.subr.mxu0 %v1461_v36  ;;  %1115 = vmatprep.subr.mxu1 %v344_v37 }
  0x29   :  { %1154 = vmatpush3.msra.mxu0 %v1461_v36  ;;  %1116 = vmatpush3.msra.mxu1 %v344_v37 }
  0x2a   :  { %1074 = vmatmul.mubr.f32.gmra.mxu0 %v70_v38  ;;  %1155 = vmatprep.subr.mxu0 %v1474_v39  ;;  %v287_v38 = vld [vmem:[%s1876_s2 + $0x50] sm:$0xff] }
  0x2b   :  { %1076 = vmatprep.mubr.f32.mxu0 %v71_v40  ;;  %1156 = vmatpush3.msra.mxu0 %v1474_v39  ;;  %v288_v40 = vld [vmem:[%s1876_s2 + $0x58] sm:$0xff] }
  0x2c   :  { %1157 = vmatprep.subr.mxu0 %v1484_v41  ;;  %1117 = vmatprep.subr.mxu1 %v343_v42 }
  0x2d   :  { %1158 = vmatpush3.msra.mxu0 %v1484_v41  ;;  %1118 = vmatpush3.msra.mxu1 %v343_v42 }
  0x2e   :  { %1077 = vmatmul.mubr.f32.gmra.mxu0 %v72_v43  ;;  %1159 = vmatprep.subr.mxu0 %v1497_v44 }
  0x2f   :  { %1079 = vmatprep.mubr.f32.mxu0 %v73_v45  ;;  %1160 = vmatpush3.msra.mxu0 %v1497_v44 }
  0x30   :  { %1161 = vmatprep.subr.mxu0 %v1507_v46  ;;  %1119 = vmatprep.subr.mxu1 %v342_v60 }
  0x31   :  { %1162 = vmatpush3.msra.mxu0 %v1507_v46  ;;  %1120 = vmatpush3.msra.mxu1 %v342_v60 }
  0x32   :  { %1080 = vmatmul.mubr.f32.gmra.mxu0 %v74_v47  ;;  %1163 = vmatprep.subr.mxu0 %v1517_v48 }
  0x33   :  { %1082 = vmatprep.mubr.f32.mxu0 %v75_v49  ;;  %1164 = vmatpush3.msra.mxu0 %v1517_v48 }
  0x34   :  { %1165 = vmatprep.subr.mxu0 %v1527_v50  ;;  %1121 = vmatprep.subr.mxu1 %v341_v62 }
  0x35   :  { %1166 = vmatpush3.msra.mxu0 %v1527_v50  ;;  %1122 = vmatpush3.msra.mxu1 %v341_v62 }
  0x36   :  { %1083 = vmatmul.mubr.f32.gmra.mxu0 %v76_v51  ;;  %1167 = vmatprep.subr.mxu0 %v1537_v52  ;;  %v291_v51 = vld [vmem:[%s1876_s2 + $0x70] sm:$0xff] }
  0x37   :  { %1085 = vmatprep.mubr.f32.mxu0 %v77_v53  ;;  %1168 = vmatpush3.msra.mxu0 %v1537_v52 }
  0x38   :  { %1169 = vmatprep.subr.mxu0 %v1547_v54  ;;  %1203 = vmatprep.subr.mxu1 %v1430_v29 }
  0x39   :  { %1170 = vmatpush3.msra.mxu0 %v1547_v54 }
  0x3a   :  { %1086 = vmatmul.mubr.f32.gmra.mxu0 %v78_v55  ;;  %1171 = vmatprep.subr.mxu0 %v1557_v56 }
  0x3b   :  { %1088 = vmatprep.mubr.f32.mxu0 %v79_v57  ;;  %1172 = vmatpush3.msra.mxu0 %v1557_v56 }
  0x3c   :  { %1173 = vmatprep.subr.mxu0 %v1572_v59 }
  0x3d   :  { %1174 = vmatpush3.msra.mxu0 %v1572_v59 }
  0x3e   :  { %1089 = vmatmul.mubr.f32.gmra.mxu0 %v80_v58  ;;  %1175 = vmatprep.subr.mxu0 %v1582_v61 }
  0x3f   :  { %1176 = vmatpush3.msra.mxu0 %v1582_v61 }
  0x40   :  { %1177 = vmatprep.subr.mxu0 %v1592_v63 }
  0x41   :  { %1178 = vmatpush3.msra.mxu0 %v1592_v63 }
  0xe2   :  { %v1069_v0 = vpop.f32.mrf.mxu0 }
  0xe3   :  { %v310_v6 = vadd.f32 %v1069_v0, %v278_v2  ;;  %v326_v7 = vmul.f32 %v1069_v0, %v278_v2 }
  0xe4   :  { %v163_v3 = vpop.f32.mrf.mxu0 }
  0xe5   :  { %v309_v4 = vadd.f32 %v277_v1, %v163_v3  ;;  %v325_v5 = vmul.f32 %v277_v1, %v163_v3 }
  0xe6   :  { %v1072_v8 = vpop.f32.mrf.mxu0 }
  0xe7   :  { %1123 = vmatprep.mubr.f32.mxu1 %v309_v4  ;;  %1179 = vmatprep.mubr.f32.mxu0 %v325_v5  ;;  %v312_v16 = vadd.f32 %v1072_v8, %v280_v10  ;;  %v328_v17 = vmul.f32 %v1072_v8, %v280_v10 }
  0xe8   :  { %v173_v11 = vpop.f32.mrf.mxu0  ;;  %1124 = vmatmul.mubr.f32.vlgmr.msra.gmra.mxu1 %v310_v6  ;;  %1180 = vmatmul.mubr.f32.vlgmr.msra.gmra.mxu0 %v326_v7 }
  0xe9   :  { %v311_v12 = vadd.f32 %v279_v9, %v173_v11  ;;  %v327_v13 = vmul.f32 %v279_v9, %v173_v11  ;;  %1219 = vmatpush3.msra.mxu1 %v1430_v29 }
  0xea   :  { %1204 = vmatprep.subr.mxu1 %v1438_v31  ;;  %v1075_v14 = vpop.f32.mrf.mxu0 }
  0xeb   :  { %1220 = vmatpush3.msra.mxu1 %v1438_v31  ;;  %1126 = vmatprep.mubr.f32.mxu1 %v311_v12  ;;  %v314_v24 = vadd.f32 %v1075_v14, %v282_v18  ;;  %v330_v25 = vmul.f32 %v1075_v14, %v282_v18  ;;  %v285_v31 = vld [vmem:[%s1876_s2 + $0x40] sm:$0xff] }
  0xec   :  { %1205 = vmatprep.subr.mxu1 %v1451_v34  ;;  %1182 = vmatprep.mubr.f32.mxu0 %v327_v13  ;;  %v183_v19 = vpop.f32.mrf.mxu0 }
  0xed   :  { %v313_v20 = vadd.f32 %v281_v15, %v183_v19  ;;  %v329_v21 = vmul.f32 %v281_v15, %v183_v19  ;;  %1127 = vmatmul.mubr.f32.gmra.mxu1 %v312_v16  ;;  %1183 = vmatmul.mubr.f32.gmra.mxu0 %v328_v17 }
  0xee   :  { %1221 = vmatpush3.msra.mxu1 %v1451_v34  ;;  %v1078_v22 = vpop.f32.mrf.mxu0  ;;  %v286_v34 = vld [vmem:[%s1876_s2 + $0x48] sm:$0xff] }
  0xef   :  { %1206 = vmatprep.subr.mxu1 %v1461_v36  ;;  %1129 = vmatprep.mubr.f32.mxu1 %v313_v20  ;;  %v316_v32 = vadd.f32 %v1078_v22, %v284_v26  ;;  %v332_v33 = vmul.f32 %v1078_v22, %v284_v26 }
  0xf0   :  { %1222 = vmatpush3.msra.mxu1 %v1461_v36  ;;  %1185 = vmatprep.mubr.f32.mxu0 %v329_v21  ;;  %v193_v27 = vpop.f32.mrf.mxu0 }
  0xf1   :  { %1207 = vmatprep.subr.mxu1 %v1474_v39  ;;  %v315_v28 = vadd.f32 %v283_v23, %v193_v27  ;;  %v331_v29 = vmul.f32 %v283_v23, %v193_v27  ;;  %1130 = vmatmul.mubr.f32.gmra.mxu1 %v314_v24 }
  0xf2   :  { %1223 = vmatpush3.msra.mxu1 %v1474_v39  ;;  %1186 = vmatmul.mubr.f32.gmra.mxu0 %v330_v25  ;;  %v1081_v30 = vpop.f32.mrf.mxu0 }
  0xf3   :  { %1208 = vmatprep.subr.mxu1 %v1484_v41  ;;  %1132 = vmatprep.mubr.f32.mxu1 %v315_v28  ;;  %v318_v39 = vadd.f32 %v1081_v30, %v286_v34 }
  0xf4   :  { %1224 = vmatpush3.msra.mxu1 %v1484_v41  ;;  %1188 = vmatprep.mubr.f32.mxu0 %v331_v29  ;;  %v203_v35 = vpop.f32.mrf.mxu0 }
  0xf5   :  { %1209 = vmatprep.subr.mxu1 %v1497_v44  ;;  %v317_v36 = vadd.f32 %v285_v31, %v203_v35  ;;  %1133 = vmatmul.mubr.f32.gmra.mxu1 %v316_v32  ;;  %v333_v58 = vmul.f32 %v285_v31, %v203_v35 }
  0xf6   :  { %1225 = vmatpush3.msra.mxu1 %v1497_v44  ;;  %1189 = vmatmul.mubr.f32.gmra.mxu0 %v332_v33  ;;  %v1084_v37 = vpop.f32.mrf.mxu0  ;;  %v289_v44 = vld [vmem:[%s1876_s2 + $0x60] sm:$0xff] }
  0xf7   :  { %1210 = vmatprep.subr.mxu1 %v1507_v46  ;;  %1135 = vmatprep.mubr.f32.mxu1 %v317_v36  ;;  %v320_v45 = vadd.f32 %v1084_v37, %v288_v40 }
  0xf8   :  { %1226 = vmatpush3.msra.mxu1 %v1507_v46  ;;  %v213_v41 = vpop.f32.mrf.mxu0  ;;  %v290_v46 = vld [vmem:[%s1876_s2 + $0x68] sm:$0xff] }
  0xf9   :  { %1211 = vmatprep.subr.mxu1 %v1517_v48  ;;  %v319_v42 = vadd.f32 %v287_v38, %v213_v41  ;;  %1136 = vmatmul.mubr.f32.gmra.mxu1 %v318_v39  ;;  %v335_v60 = vmul.f32 %v287_v38, %v213_v41 }
  0xfa   :  { %1227 = vmatpush3.msra.mxu1 %v1517_v48  ;;  %v1087_v43 = vpop.f32.mrf.mxu0 }
  0xfb   :  { %1212 = vmatprep.subr.mxu1 %v1527_v50  ;;  %1138 = vmatprep.mubr.f32.mxu1 %v319_v42  ;;  %v322_v53 = vadd.f32 %v1087_v43, %v290_v46  ;;  %v338_v0 = vmul.f32 %v1087_v43, %v290_v46 }
  0xfc   :  { %1228 = vmatpush3.msra.mxu1 %v1527_v50  ;;  %v223_v47 = vpop.f32.mrf.mxu0  ;;  %v292_v50 = vld [vmem:[%s1876_s2 + $0x78] sm:$0xff] }
  0xfd   :  { %1213 = vmatprep.subr.mxu1 %v1537_v52  ;;  %v321_v49 = vadd.f32 %v289_v44, %v223_v47  ;;  %1139 = vmatmul.mubr.f32.gmra.mxu1 %v320_v45  ;;  %v337_v62 = vmul.f32 %v289_v44, %v223_v47 }
  0xfe   :  { %1229 = vmatpush3.msra.mxu1 %v1537_v52  ;;  %v1090_v48 = vpop.f32.mrf.mxu0 }
  0xff   :  { %1214 = vmatprep.subr.mxu1 %v1547_v54  ;;  %1141 = vmatprep.mubr.f32.mxu1 %v321_v49  ;;  %v324_v52 = vadd.f32 %v1090_v48, %v292_v50  ;;  %v340_v1 = vmul.f32 %v1090_v48, %v292_v50 }
 0x100   :  { %1230 = vmatpush3.msra.mxu1 %v1547_v54  ;;  %v233_v55 = vpop.f32.mrf.mxu0  ;;  %v334_v54 = vmul.f32 %v1081_v30, %v286_v34 }
 0x101   :  { %1215 = vmatprep.subr.mxu1 %v1557_v56  ;;  %v323_v57 = vadd.f32 %v291_v51, %v233_v55  ;;  %1142 = vmatmul.mubr.f32.gmra.mxu1 %v322_v53 }
 0x102   :  { %1231 = vmatpush3.msra.mxu1 %v1557_v56  ;;  %v336_v56 = vmul.f32 %v1084_v37, %v288_v40 }
 0x103   :  { %1216 = vmatprep.subr.mxu1 %v1572_v59  ;;  %1144 = vmatprep.mubr.f32.mxu1 %v323_v57 }
 0x104   :  { %1232 = vmatpush3.msra.mxu1 %v1572_v59  ;;  %v339_v59 = vmul.f32 %v291_v51, %v233_v55 }
 0x105   :  { %1217 = vmatprep.subr.mxu1 %v1582_v61  ;;  %1145 = vmatmul.mubr.f32.gmra.mxu1 %v324_v52 }
 0x106   :  { %1233 = vmatpush3.msra.mxu1 %v1582_v61  ;;  %1191 = vmatprep.mubr.f32.mxu1 %v333_v58  ;;  %v1679_v61 = vld [vmem:[%s1878_s4] ss:$0 sm:$0xff]  ;;  %s1292_s4 = smov [#allocation3]  }
 0x107   :  { %1218 = vmatprep.subr.mxu1 %v1592_v63 }
 0x108   :  { %1234 = vmatpush3.msra.mxu1 %v1592_v63  ;;  %v1684_v63 = vld [vmem:[%s1880_s6] ss:$0 sm:$0xff]  ;;  %s922_s6 = sshll.u32 %s1292_s4, 4  ;;  %s923_s6 = int_to_ptr.vmem [resolvable:$true] %s922_s6 }
 0x109   :  { %1192 = vmatmul.mubr.f32.vlgmr.msra.gmra.mxu1 %v334_v54  ;;  %s1270_s25 = scalar_lea.vmem %s923_s6, 2048  ;;  %p1275_p1 = scmp.lt.s32.totalorder %s923_s6, %s923_s6 }
 0x10a   :  { %1194 = vmatprep.mubr.f32.mxu1 %v335_v60  ;;  %p1271_p0 = scmp.ne.s32.totalorder %s923_s6, %s1270_s25  ;;  %p1276_p2 = scmp.lt.s32.totalorder %s1270_s25, %s1270_s25 }
 0x10c   :  { %p1277_p3 = por %p1276_p2, %p1275_p1 }
 0x10d   :  { %1195 = vmatmul.mubr.f32.gmra.mxu1 %v336_v56 }
 0x10e   :  { %1197 = vmatprep.mubr.f32.mxu1 %v337_v62  ;;  %p1278_p4 = pnand %p1277_p3, %p1271_p0 }
 0x111   :  { %1198 = vmatmul.mubr.f32.gmra.mxu1 %v338_v0 }
 0x112   :  { %1200 = vmatprep.mubr.f32.mxu1 %v339_v59 }
 0x115   :  { %1201 = vmatmul.mubr.f32.gmra.mxu1 %v340_v1 }
 0x1a8   :  { %v1125_v2 = vpop.f32.mrf.mxu1  ;;  %v1181_v3 = vpop.f32.mrf.mxu0 }
 0x1a9   :  { %v436_v4 = vadd.f32 %v1125_v2, %v1679_v61  ;;  %v604_v5 = vadd.f32 %v1181_v3, %v1684_v63 }
 0x1aa   :  { %v430_v6 = vpop.f32.mrf.mxu1  ;;  %v598_v7 = vpop.f32.mrf.mxu0 }
 0x1ab   :  { %vm678_vm0 = vcmp.ge.f32.partialorder %v436_v4, 0.0  ;;  %v694_v8 = vmul.f32 0.01, %v436_v4  ;;  %vm726_vm1 = vcmp.ge.f32.partialorder %v604_v5, 0.0  ;;  %v742_v9 = vmul.f32 0.01, %v604_v5 }
 0x1ac   :  { %v431_v10 = vadd.f32 %v1679_v61, %v430_v6  ;;  %v599_v11 = vadd.f32 %v1684_v63, %v598_v7 }
 0x1ad   :  { %v710_v12 = vsel %vm678_vm0, %v436_v4, %v694_v8  ;;  %v758_v13 = vsel %vm726_vm1, %v604_v5, %v742_v9  ;;  %v1128_v14 = vpop.f32.mrf.mxu1  ;;  %v1184_v15 = vpop.f32.mrf.mxu0 }
 0x1ae   :  { %vm677_vm2 = vcmp.ge.f32.partialorder %v431_v10, 0.0  ;;  %v693_v16 = vmul.f32 0.01, %v431_v10  ;;  %v446_v17 = vadd.f32 %v1128_v14, %v1679_v61  ;;  %v614_v18 = vadd.f32 %v1184_v15, %v1684_v63 }
 0x1af   :  { %v440_v19 = vpop.f32.mrf.mxu1  ;;  %v608_v20 = vpop.f32.mrf.mxu0  ;;  %v1692_v21 = vadd.f32 %v758_v13, %v710_v12  ;;  %vm725_vm3 = vcmp.ge.f32.partialorder %v599_v11, 0.0  ;;  %v741_v22 = vmul.f32 0.01, %v599_v11 }
 0x1b0   :  { %v441_v23 = vadd.f32 %v1679_v61, %v440_v19  ;;  %v609_v24 = vadd.f32 %v1684_v63, %v608_v20  ;;  %vm680_vm4 = vcmp.ge.f32.partialorder %v446_v17, 0.0  ;;  %v696_v25 = vmul.f32 0.01, %v446_v17 }
 0x1b1   :  { %vm728_vm5 = vcmp.ge.f32.partialorder %v614_v18, 0.0  ;;  %v744_v26 = vmul.f32 0.01, %v614_v18  ;;  %v1131_v27 = vpop.f32.mrf.mxu1  ;;  %790 = vst [vmem:[#allocation3 + $0x8] sm:$0xff] %v1692_v21  ;;  %v806_v37 = vmul.f32 %v1692_v21, %v1692_v21  ;;  %v709_v39 = vsel %vm677_vm2, %v431_v10, %v693_v16 }
 0x1b2   :  { %vm679_vm6 = vcmp.ge.f32.partialorder %v441_v23, 0.0  ;;  %v695_v28 = vmul.f32 0.01, %v441_v23  ;;  %vm727_vm7 = vcmp.ge.f32.partialorder %v609_v24, 0.0  ;;  %v743_v29 = vmul.f32 0.01, %v609_v24  ;;  %v1187_v30 = vpop.f32.mrf.mxu0 }
 0x1b3   :  { %v712_v31 = vsel %vm680_vm4, %v446_v17, %v696_v25  ;;  %v456_v32 = vadd.f32 %v1131_v27, %v1679_v61  ;;  %v450_v33 = vpop.f32.mrf.mxu1  ;;  %v760_v34 = vsel %vm728_vm5, %v614_v18, %v744_v26  ;;  %v624_v35 = vadd.f32 %v1187_v30, %v1684_v63  ;;  %823 = vadd.xlane.f32.xlu0 %v806_v37 }
 0x1b4   :  { %v451_v36 = vadd.f32 %v1679_v61, %v450_v33  ;;  %v618_v38 = vpop.f32.mrf.mxu0  ;;  %v757_v40 = vsel %vm725_vm3, %v599_v11, %v741_v22  ;;  %v711_v41 = vsel %vm679_vm6, %v441_v23, %v695_v28  ;;  %v759_v42 = vsel %vm727_vm7, %v609_v24, %v743_v29 }
 0x1b5   :  { %v1134_v43 = vpop.f32.mrf.mxu1  ;;  %v619_v45 = vadd.f32 %v1684_v63, %v618_v38  ;;  %vm682_vm9 = vcmp.ge.f32.partialorder %v456_v32, 0.0  ;;  %v698_v49 = vmul.f32 0.01, %v456_v32  ;;  %v1707_v53 = vadd.f32 %v760_v34, %v712_v31 }
 0x1b6   :  { %vm681_vm8 = vcmp.ge.f32.partialorder %v451_v36, 0.0  ;;  %v697_v44 = vmul.f32 0.01, %v451_v36  ;;  %v466_v46 = vadd.f32 %v1134_v43, %v1679_v61  ;;  %v1190_v47 = vpop.f32.mrf.mxu0  ;;  %vm730_vm10 = vcmp.ge.f32.partialorder %v624_v35, 0.0 }
 0x1b7   :  { %v634_v48 = vadd.f32 %v1190_v47, %v1684_v63  ;;  %v460_v51 = vpop.f32.mrf.mxu1  ;;  %v746_v50 = vmul.f32 0.01, %v624_v35  ;;  %vm729_vm11 = vcmp.ge.f32.partialorder %v619_v45, 0.0  ;;  %v745_v55 = vmul.f32 0.01, %v619_v45  ;;  %792 = vst [vmem:[#allocation3 + $0x18] sm:$0xff] %v1707_v53 }
 0x1b8   :  { %v628_v57 = vpop.f32.mrf.mxu0  ;;  %v713_v52 = vsel %vm681_vm8, %v451_v36, %v697_v44  ;;  %v700_v58 = vmul.f32 0.01, %v466_v46  ;;  %v461_v60 = vadd.f32 %v1679_v61, %v460_v51  ;;  %v808_v0 = vmul.f32 %v1707_v53, %v1707_v53 }
 0x1b9   :  { %v748_v54 = vmul.f32 0.01, %v634_v48  ;;  %v1137_v56 = vpop.f32.mrf.mxu1  ;;  %v761_v62 = vsel %vm729_vm11, %v619_v45, %v745_v55  ;;  %v629_v59 = vadd.f32 %v1684_v63, %v628_v57  ;;  %v1715_v1 = vadd.f32 %v757_v40, %v709_v39 }
 0x1ba   :  { %vm684_vm12 = vcmp.ge.f32.partialorder %v466_v46, 0.0  ;;  %vm732_vm13 = vcmp.ge.f32.partialorder %v634_v48, 0.0  ;;  %vm683_vm14 = vcmp.ge.f32.partialorder %v461_v60, 0.0  ;;  %v699_v2 = vmul.f32 0.01, %v461_v60  ;;  %827 = vadd.xlane.f32.xlu1 %v808_v0 }
 0x1bb   :  { %v470_v3 = vpop.f32.mrf.mxu1  ;;  %vm731_vm15 = vcmp.ge.f32.partialorder %v629_v59, 0.0  ;;  %v747_v4 = vmul.f32 0.01, %v629_v59  ;;  %v805_v5 = vmul.f32 %v1715_v1, %v1715_v1  ;;  %789 = vst [vmem:[#allocation3] sm:$0xff] %v1715_v1  ;;  %v714_v6 = vsel %vm682_vm9, %v456_v32, %v698_v49 }
 0x1bc   :  { %v762_v7 = vsel %vm730_vm10, %v624_v35, %v746_v50  ;;  %v1722_v8 = vadd.f32 %v759_v42, %v711_v41  ;;  %v1724_v10 = vadd.f32 %v761_v62, %v713_v52  ;;  %v716_v11 = vsel %vm684_vm12, %v466_v46, %v700_v58 }
 0x1bd   :  { %v1140_v9 = vpop.f32.mrf.mxu1  ;;  %v764_v12 = vsel %vm732_vm13, %v634_v48, %v748_v54  ;;  %v715_v13 = vsel %vm683_vm14, %v461_v60, %v699_v2  ;;  %v763_v14 = vsel %vm731_vm15, %v629_v59, %v747_v4  ;;  %821 = vadd.xlane.f32.xlu0 %v805_v5  ;;  %v1732_v18 = vadd.f32 %v762_v7, %v714_v6 }
 0x1be   :  { %v807_v15 = vmul.f32 %v1722_v8, %v1722_v8  ;;  %791 = vst [vmem:[#allocation3 + $0x10] sm:$0xff] %v1722_v8  ;;  %793 = vst [vmem:[#allocation3 + $0x20] sm:$0xff] %v1724_v10  ;;  %v809_v16 = vmul.f32 %v1724_v10, %v1724_v10  ;;  %v1734_v20 = vadd.f32 %v763_v14, %v715_v13 }
 0x1bf   :  { %v480_v17 = vpop.f32.mrf.mxu1  ;;  %v1736_v22 = vadd.f32 %v764_v12, %v716_v11  ;;  %794 = vst [vmem:[#allocation3 + $0x28] sm:$0xff] %v1732_v18  ;;  %v810_v23 = vmul.f32 %v1732_v18, %v1732_v18  ;;  %v476_v26 = vadd.f32 %v1137_v56, %v1679_v61  ;;  %v471_v27 = vadd.f32 %v1679_v61, %v470_v3 }
 0x1c0   :  { %825 = vadd.xlane.f32.xlu1 %v807_v15  ;;  %795 = vst [vmem:[#allocation3 + $0x30] sm:$0xff] %v1734_v20  ;;  %v811_v24 = vmul.f32 %v1734_v20, %v1734_v20  ;;  %v486_v28 = vadd.f32 %v1140_v9, %v1679_v61  ;;  %v481_v29 = vadd.f32 %v1679_v61, %v480_v17 }
 0x1c1   :  { %v1143_v19 = vpop.f32.mrf.mxu1  ;;  %829 = vadd.xlane.f32.xlu0 %v809_v16  ;;  %796 = vst [vmem:[#allocation3 + $0x38] sm:$0xff] %v1736_v22  ;;  %v812_v31 = vmul.f32 %v1736_v22, %v1736_v22  ;;  %vm686_vm0 = vcmp.ge.f32.partialorder %v476_v26, 0.0  ;;  %v702_v33 = vmul.f32 0.01, %v476_v26  ;;  %v701_v34 = vmul.f32 0.01, %v471_v27 }
 0x1c2   :  { %v704_v35 = vmul.f32 0.01, %v486_v28  ;;  %v703_v36 = vmul.f32 0.01, %v481_v29  ;;  %vm685_vm1 = vcmp.ge.f32.partialorder %v471_v27, 0.0  ;;  %vm688_vm2 = vcmp.ge.f32.partialorder %v486_v28, 0.0 }
 0x1c3   :  { %v490_v25 = vpop.f32.mrf.mxu1  ;;  %vm687_vm3 = vcmp.ge.f32.partialorder %v481_v29, 0.0  ;;  %v496_v39 = vadd.f32 %v1143_v19, %v1679_v61  ;;  %v718_v44 = vsel %vm686_vm0, %v476_v26, %v702_v33  ;;  %v717_v45 = vsel %vm685_vm1, %v471_v27, %v701_v34 }
 0x1c4   :  { %831 = vadd.xlane.f32.xlu1 %v810_v23  ;;  %v491_v40 = vadd.f32 %v1679_v61, %v490_v25  ;;  %v720_v46 = vsel %vm688_vm2, %v486_v28, %v704_v35  ;;  %v719_v47 = vsel %vm687_vm3, %v481_v29, %v703_v36 }
 0x1c5   :  { %v1146_v30 = vpop.f32.mrf.mxu1  ;;  %833 = vadd.xlane.f32.xlu0 %v811_v24  ;;  %vm690_vm6 = vcmp.ge.f32.partialorder %v496_v39, 0.0  ;;  %v706_v55 = vmul.f32 0.01, %v496_v39 }
 0x1c6   :  { %vm689_vm7 = vcmp.ge.f32.partialorder %v491_v40, 0.0  ;;  %v705_v56 = vmul.f32 0.01, %v491_v40  ;;  %v506_v62 = vadd.f32 %v1146_v30, %v1679_v61 }
 0x1c7   :  { %v500_v32 = vpop.f32.mrf.mxu1  ;;  %v722_v6 = vsel %vm690_vm6, %v496_v39, %v706_v55 }
 0x1c8   :  { %835 = vadd.xlane.f32.xlu1 %v812_v31  ;;  %v501_v7 = vadd.f32 %v1679_v61, %v500_v32  ;;  %v721_v16 = vsel %vm689_vm7, %v491_v40, %v705_v56  ;;  %v708_v17 = vmul.f32 0.01, %v506_v62  ;;  %vm692_vm12 = vcmp.ge.f32.partialorder %v506_v62, 0.0 }
 0x1c9   :  { %v1193_v37 = vpop.f32.mrf.mxu1 }
 0x1ca   :  { %v644_v38 = vadd.f32 %v1193_v37, %v1684_v63  ;;  %v707_v27 = vmul.f32 0.01, %v501_v7  ;;  %vm691_vm14 = vcmp.ge.f32.partialorder %v501_v7, 0.0  ;;  %v724_v36 = vsel %vm692_vm12, %v506_v62, %v708_v17 }
 0x1cb   :  { %v638_v41 = vpop.f32.mrf.mxu1 }
 0x1cc   :  { %vm734_vm4 = vcmp.ge.f32.partialorder %v644_v38, 0.0  ;;  %v750_v42 = vmul.f32 0.01, %v644_v38  ;;  %v639_v43 = vadd.f32 %v1684_v63, %v638_v41  ;;  %v723_v40 = vsel %vm691_vm14, %v501_v7, %v707_v27 }
 0x1cd   :  { %v1196_v49 = vpop.f32.mrf.mxu1 }
 0x1ce   :  { %v766_v48 = vsel %vm734_vm4, %v644_v38, %v750_v42  ;;  %vm733_vm5 = vcmp.ge.f32.partialorder %v639_v43, 0.0  ;;  %v749_v51 = vmul.f32 0.01, %v639_v43  ;;  %v654_v50 = vadd.f32 %v1196_v49, %v1684_v63 }
 0x1cf   :  { %v648_v57 = vpop.f32.mrf.mxu1  ;;  %v1757_v52 = vadd.f32 %v766_v48, %v718_v44 }
 0x1d0   :  { %v765_v58 = vsel %vm733_vm5, %v639_v43, %v749_v51  ;;  %vm736_vm8 = vcmp.ge.f32.partialorder %v654_v50, 0.0  ;;  %v752_v54 = vmul.f32 0.01, %v654_v50  ;;  %v649_v60 = vadd.f32 %v1684_v63, %v648_v57 }
 0x1d1   :  { %v1199_v0 = vpop.f32.mrf.mxu1  ;;  %v814_v59 = vmul.f32 %v1757_v52, %v1757_v52  ;;  %798 = vst [vmem:[#allocation3 + $0x48] sm:$0xff] %v1757_v52  ;;  %v1764_v2 = vadd.f32 %v765_v58, %v717_v45 }
 0x1d2   :  { %v768_v3 = vsel %vm736_vm8, %v654_v50, %v752_v54  ;;  %vm735_vm9 = vcmp.ge.f32.partialorder %v649_v60, 0.0  ;;  %v751_v4 = vmul.f32 0.01, %v649_v60  ;;  %v664_v5 = vadd.f32 %v1199_v0, %v1684_v63 }
 0x1d3   :  { %839 = vadd.xlane.f32.xlu1 %v814_v59  ;;  %v658_v9 = vpop.f32.mrf.mxu1  ;;  %v813_v11 = vmul.f32 %v1764_v2, %v1764_v2  ;;  %797 = vst [vmem:[#allocation3 + $0x40] sm:$0xff] %v1764_v2  ;;  %v1772_v12 = vadd.f32 %v768_v3, %v720_v46 }
 0x1d4   :  { %v767_v13 = vsel %vm735_vm9, %v649_v60, %v751_v4  ;;  %vm738_vm10 = vcmp.ge.f32.partialorder %v664_v5, 0.0  ;;  %v754_v14 = vmul.f32 0.01, %v664_v5  ;;  %v659_v15 = vadd.f32 %v1684_v63, %v658_v9 }
 0x1d5   :  { %v1202_v19 = vpop.f32.mrf.mxu1  ;;  %837 = vadd.xlane.f32.xlu0 %v813_v11  ;;  %v816_v61 = vmul.f32 %v1772_v12, %v1772_v12  ;;  %800 = vst [vmem:[#allocation3 + $0x58] sm:$0xff] %v1772_v12  ;;  %v1779_v23 = vadd.f32 %v767_v13, %v719_v47 }
 0x1d6   :  { %v770_v24 = vsel %vm738_vm10, %v664_v5, %v754_v14  ;;  %vm737_vm11 = vcmp.ge.f32.partialorder %v659_v15, 0.0  ;;  %v753_v25 = vmul.f32 0.01, %v659_v15  ;;  %v674_v26 = vadd.f32 %v1202_v19, %v1684_v63 }
 0x1d7   :  { %843 = vadd.xlane.f32.xlu1 %v816_v61  ;;  %v668_v28 = vpop.f32.mrf.mxu1  ;;  %799 = vst [vmem:[#allocation3 + $0x50] sm:$0xff] %v1779_v23  ;;  %v815_v29 = vmul.f32 %v1779_v23, %v1779_v23  ;;  %v1785_v30 = vadd.f32 %v770_v24, %v722_v6 }
 0x1d8   :  { %v769_v31 = vsel %vm737_vm11, %v659_v15, %v753_v25  ;;  %vm740_vm13 = vcmp.ge.f32.partialorder %v674_v26, 0.0  ;;  %v756_v32 = vmul.f32 0.01, %v674_v26  ;;  %v669_v33 = vadd.f32 %v1684_v63, %v668_v28 }
 0x1d9   :  { %841 = vadd.xlane.f32.xlu0 %v815_v29  ;;  %v818_v34 = vmul.f32 %v1785_v30, %v1785_v30  ;;  %802 = vst [vmem:[#allocation3 + $0x68] sm:$0xff] %v1785_v30  ;;  %v1791_v35 = vadd.f32 %v769_v31, %v721_v16 }
 0x1da   :  { %v772_v37 = vsel %vm740_vm13, %v674_v26, %v756_v32  ;;  %vm739_vm15 = vcmp.ge.f32.partialorder %v669_v33, 0.0  ;;  %v755_v38 = vmul.f32 0.01, %v669_v33 }
 0x1db   :  { %847 = vadd.xlane.f32.xlu1 %v818_v34  ;;  %801 = vst [vmem:[#allocation3 + $0x60] sm:$0xff] %v1791_v35  ;;  %v817_v63 = vmul.f32 %v1791_v35, %v1791_v35  ;;  %v1797_v39 = vadd.f32 %v772_v37, %v724_v36 }
 0x1dc   :  { %v771_v41 = vsel %vm739_vm15, %v669_v33, %v755_v38 }
 0x1dd   :  { %845 = vadd.xlane.f32.xlu0 %v817_v63  ;;  %v820_v42 = vmul.f32 %v1797_v39, %v1797_v39  ;;  %804 = vst [vmem:[#allocation3 + $0x78] sm:$0xff] %v1797_v39  ;;  %v1802_v43 = vadd.f32 %v771_v41, %v723_v40 }
 0x1df   :  { %851 = vadd.xlane.f32.xlu1 %v820_v42  ;;  %v819_v44 = vmul.f32 %v1802_v43, %v1802_v43  ;;  %803 = vst [vmem:[#allocation3 + $0x70] sm:$0xff] %v1802_v43 }
 0x1e1   :  { %849 = vadd.xlane.f32.xlu0 %v819_v44 }
 0x1e2   :  { %1281 = shalt.err (!%p1278_p4)
}
 0x1e3   :  { %s1293_s26 = smov 128   ;;  %s1294_s27 = smov 8  }
 0x1e4   :  { %928 = dma.vmem_to_hbm [thread:$0]  %s923_s6, 2048, %s1881_s7, [#allocation4], %s1293_s26, %s1293_s26, %s1294_s27  }
 0x23c   :  { %v824_v45 = vpop.xlane.xlu0 %823 }
 0x23d   :  { %v854_v46 = vmax.f32 %v824_v45, 1e-24 }
 0x23f   :  { %1238 = vrsqrt.f32 %v854_v46 }
 0x243   :  { %v828_v47 = vpop.xlane.xlu1 %827 }
 0x244   :  { %v856_v49 = vmax.f32 %v828_v47, 1e-24 }
 0x246   :  { %v822_v48 = vpop.xlane.xlu0 %821  ;;  %1240 = vrsqrt.f32 %v856_v49 }
 0x247   :  { %v853_v51 = vmax.f32 %v822_v48, 1e-24 }
 0x249   :  { %1242 = vrsqrt.f32 %v853_v51  ;;  %v826_v50 = vpop.xlane.xlu1 %825 }
 0x24a   :  { %v855_v55 = vmax.f32 %v826_v50, 1e-24  ;;  %v830_v57 = vpop.xlane.xlu0 %829 }
 0x24b   :  { %v857_v58 = vmax.f32 %v830_v57, 1e-24 }
 0x24c   :  { %1244 = vrsqrt.f32 %v855_v55  ;;  %v1239_v60 = vpop.eup %1238 }
 0x24d   :  { %1246 = vrsqrt.f32 %v857_v58  ;;  %v832_v54 = vpop.xlane.xlu1 %831  ;;  %v886_v0 = vmul.f32 %v1239_v60, %v1692_v21 }
 0x24e   :  { %v858_v56 = vmax.f32 %v832_v54, 1e-24  ;;  %v834_v62 = vpop.xlane.xlu0 %833 }
 0x24f   :  { %v859_v59 = vmax.f32 %v834_v62, 1e-24  ;;  %902 = vst [vmem:[%s1882_s8 + $0x8] sm:$0xff] %v886_v0 }
 0x250   :  { %1248 = vrsqrt.f32 %v858_v56 }
 0x251   :  { %1250 = vrsqrt.f32 %v859_v59  ;;  %v836_v3 = vpop.xlane.xlu1 %835 }
 0x252   :  { %v860_v4 = vmax.f32 %v836_v3, 1e-24 }
 0x253   :  { %v1241_v5 = vpop.eup %1240 }
 0x254   :  { %1252 = vrsqrt.f32 %v860_v4  ;;  %v888_v6 = vmul.f32 %v1241_v5, %v1707_v53 }
 0x256   :  { %v1243_v7 = vpop.eup %1242  ;;  %904 = vst [vmem:[%s1882_s8 + $0x18] sm:$0xff] %v888_v6 }
 0x257   :  { %v885_v21 = vmul.f32 %v1243_v7, %v1715_v1 }
 0x259   :  { %v1245_v9 = vpop.eup %1244  ;;  %901 = vst [vmem:[%s1882_s8] sm:$0xff] %v885_v21 }
 0x25a   :  { %v1247_v11 = vpop.eup %1246  ;;  %v887_v13 = vmul.f32 %v1245_v9, %v1722_v8 }
 0x25b   :  { %v889_v14 = vmul.f32 %v1247_v11, %v1724_v10 }
 0x25c   :  { %v840_v15 = vpop.xlane.xlu1 %839  ;;  %903 = vst [vmem:[%s1882_s8 + $0x10] sm:$0xff] %v887_v13 }
 0x25d   :  { %v862_v53 = vmax.f32 %v840_v15, 1e-24  ;;  %v1249_v16 = vpop.eup %1248  ;;  %905 = vst [vmem:[%s1882_s8 + $0x20] sm:$0xff] %v889_v14 }
 0x25e   :  { %v838_v1 = vpop.xlane.xlu0 %837  ;;  %v1251_v17 = vpop.eup %1250  ;;  %v890_v19 = vmul.f32 %v1249_v16, %v1732_v18 }
 0x25f   :  { %1254 = vrsqrt.f32 %v862_v53  ;;  %v861_v61 = vmax.f32 %v838_v1, 1e-24  ;;  %v891_v8 = vmul.f32 %v1251_v17, %v1734_v20 }
 0x260   :  { %v844_v10 = vpop.xlane.xlu1 %843  ;;  %906 = vst [vmem:[%s1882_s8 + $0x28] sm:$0xff] %v890_v19 }
 0x261   :  { %1256 = vrsqrt.f32 %v861_v61  ;;  %v864_v24 = vmax.f32 %v844_v10, 1e-24  ;;  %v1253_v25 = vpop.eup %1252  ;;  %907 = vst [vmem:[%s1882_s8 + $0x30] sm:$0xff] %v891_v8 }
 0x262   :  { %v842_v26 = vpop.xlane.xlu0 %841  ;;  %v892_v27 = vmul.f32 %v1253_v25, %v1736_v22 }
 0x263   :  { %1258 = vrsqrt.f32 %v864_v24  ;;  %v863_v18 = vmax.f32 %v842_v26, 1e-24 }
 0x264   :  { %v848_v28 = vpop.xlane.xlu1 %847  ;;  %908 = vst [vmem:[%s1882_s8 + $0x38] sm:$0xff] %v892_v27 }
 0x265   :  { %1260 = vrsqrt.f32 %v863_v18  ;;  %v866_v20 = vmax.f32 %v848_v28, 1e-24 }
 0x266   :  { %v846_v29 = vpop.xlane.xlu0 %845 }
 0x267   :  { %1262 = vrsqrt.f32 %v866_v20  ;;  %v865_v31 = vmax.f32 %v846_v29, 1e-24 }
 0x268   :  { %v852_v32 = vpop.xlane.xlu1 %851 }
 0x269   :  { %1264 = vrsqrt.f32 %v865_v31  ;;  %v868_v33 = vmax.f32 %v852_v32, 1e-24 }
 0x26a   :  { %v850_v34 = vpop.xlane.xlu0 %849 }
 0x26b   :  { %1266 = vrsqrt.f32 %v868_v33  ;;  %v867_v36 = vmax.f32 %v850_v34, 1e-24 }
 0x26c   :  { %v1255_v37 = vpop.eup %1254 }
 0x26d   :  { %v894_v22 = vmul.f32 %v1255_v37, %v1757_v52  ;;  %1268 = vrsqrt.f32 %v867_v36 }
 0x26e   :  { %v1257_v38 = vpop.eup %1256 }
 0x26f   :  { %910 = vst [vmem:[%s1882_s8 + $0x48] sm:$0xff] %v894_v22  ;;  %v893_v63 = vmul.f32 %v1257_v38, %v1764_v2 }
 0x270   :  { %v1259_v40 = vpop.eup %1258 }
 0x271   :  { %909 = vst [vmem:[%s1882_s8 + $0x40] sm:$0xff] %v893_v63  ;;  %v896_v41 = vmul.f32 %v1259_v40, %v1772_v12 }
 0x272   :  { %v1261_v42 = vpop.eup %1260 }
 0x273   :  { %912 = vst [vmem:[%s1882_s8 + $0x58] sm:$0xff] %v896_v41  ;;  %v895_v52 = vmul.f32 %v1261_v42, %v1779_v23 }
 0x274   :  { %v1263_v44 = vpop.eup %1262 }
 0x275   :  { %911 = vst [vmem:[%s1882_s8 + $0x50] sm:$0xff] %v895_v52  ;;  %v898_v2 = vmul.f32 %v1263_v44, %v1785_v30 }
 0x276   :  { %v1265_v45 = vpop.eup %1264 }
 0x277   :  { %914 = vst [vmem:[%s1882_s8 + $0x68] sm:$0xff] %v898_v2  ;;  %v897_v12 = vmul.f32 %v1265_v45, %v1791_v35 }
 0x278   :  { %v1267_v46 = vpop.eup %1266 }
 0x279   :  { %913 = vst [vmem:[%s1882_s8 + $0x60] sm:$0xff] %v897_v12  ;;  %v900_v23 = vmul.f32 %v1267_v46, %v1797_v39 }
 0x27a   :  { %v1269_v47 = vpop.eup %1268 }
 0x27b   :  { %916 = vst [vmem:[%s1882_s8 + $0x78] sm:$0xff] %v900_v23  ;;  %v899_v30 = vmul.f32 %v1269_v47, %v1802_v43 }
 0x27d   :  { %915 = vst [vmem:[%s1882_s8 + $0x70] sm:$0xff] %v899_v30 }
 0x27e   :  { %1290 = dma.done.wait [#allocation4], 2048  }
 0x27f   :  { %1291 = vsyncadd [#allocation4], 4294965248 }
 0x280   :  { %936 = vsyncpa [#allocation4], 1 }

</bundles_post_ra>
